<compile_context>
chip_gen: v7x
topology: tpu7x:2x2x1
jax: 0.10.0
libtpu: 0.0.40
codegen_flags: <defaults>
</compile_context>

<pallas_src>
import jax
import jax.numpy as jnp
from jax.experimental import pallas as pl
from jax.experimental.pallas import tpu as pltpu

LN_EPS = 1e-5   # nn.LayerNorm default


# ----------------------------------------------------------------------------
# Fused kernel: hypernetwork MLP (per batch, at n==0) + BatchLinear apply
# ----------------------------------------------------------------------------
def _make_fused_kernel(num_fc_layers, in_ch, out_ch):
    def kernel(*refs):
        # refs = [z] + num_fc_layers*[w,b,gamma,beta] + [wf,bf,x]
        #        + [wt_out, b_out, y_out] + [wt_sc, bs_sc]
        z_ref = refs[0]
        idx = 1
        fc = []
        for _ in range(num_fc_layers):
            fc.append(refs[idx:idx + 4])
            idx += 4
        wf_ref, bf_ref, x_ref = refs[idx], refs[idx + 1], refs[idx + 2]
        wt_out, b_out, y_out = refs[idx + 3], refs[idx + 4], refs[idx + 5]
        wt_sc, bs_sc = refs[idx + 6], refs[idx + 7]

        # --- hypernetwork MLP: run once per batch element (first n-step only) ---
        @pl.when(pl.program_id(1) == 0)
        def _():
            h = z_ref[0]                                        # (1, hyper_in_ch)
            for (w_ref, b_ref, g_ref, be_ref) in fc:
                h = jnp.dot(h, w_ref[...],
                            preferred_element_type=jnp.float32) + b_ref[...]
                # LayerNorm over the feature (lane) axis
                mu = jnp.mean(h, axis=-1, keepdims=True)
                var = jnp.mean(jnp.square(h - mu), axis=-1, keepdims=True)
                h = (h - mu) * jax.lax.rsqrt(var + LN_EPS)
                h = h * g_ref[...] + be_ref[...]
                h = jnp.maximum(h, 0.0)                         # ReLU
            hypo = (jnp.dot(h, wf_ref[...],
                            preferred_element_type=jnp.float32) + bf_ref[...])  # (1, P)

            # wf/bf columns were pre-permuted (trace-time) so the first
            # in_ch*out_ch entries are W^T in (in_ch, out_ch) row-major order.
            # Unpack with static, lane-aligned slices (no in-kernel transpose).
            for i in range(in_ch):
                wt_sc[i:i + 1, :] = hypo[:, i * out_ch:(i + 1) * out_ch]
            bs_sc[...] = hypo[:, in_ch * out_ch:in_ch * out_ch + out_ch]

            wt_out[0] = wt_sc[...]            # predicted W^T  (in_ch, out_ch)
            b_out[0] = bs_sc[...]             # predicted bias (1, out_ch)

        # --- BatchLinear apply: every n-step, W^T already resident in VMEM ---
        y = (jnp.dot(x_ref[0], wt_sc[...],
                     preferred_element_type=jnp.float32) + bs_sc[...])
        y_out[0] = y.astype(y_out.dtype)

    return kernel


# ----------------------------------------------------------------------------
# Wrapper: HyperLinear.forward + BatchLinear.forward, fused
# ----------------------------------------------------------------------------
def hyper_linear_batch_apply(hyper_input, x, kparams, in_ch, out_ch, *, tile_n=None):
    """Fused: weights, biases = HyperLinear(hyper_input); y = BatchLinear(x).

    hyper_input: (B, hyper_in_ch)    x: (B, N, in_ch)
    kparams: params prepared by `prepare_params_for_kernel` (wf/bf column-permuted).
    Returns (weights (B,out_ch,in_ch), biases (B,1,out_ch), y (B,N,out_ch)).
    """
    B, hyper_in = hyper_input.shape
    _, N, _ = x.shape
    fc_layers = kparams["fc_layers"]
    wf, bf = kparams["wf"], kparams["bf"]

    if tile_n is None:
        tile_n = min(N, 1024)                 # cover N per batch when it fits
    nt = pl.cdiv(N, tile_n)

    z3 = hyper_input.reshape(B, 1, hyper_in)  # leading batch dim, (8,128)-safe block

    flat_inputs = [z3]
    for (w, b, g, be) in fc_layers:
        flat_inputs += [w, b, g, be]
    flat_inputs += [wf, bf, x]

    in_specs = [pl.BlockSpec((1, 1, hyper_in), lambda b, n: (b, 0, 0))]
    for (w, b, g, be) in fc_layers:
        for a in (w, b, g, be):
            in_specs.append(pl.BlockSpec(a.shape, lambda b, n: (0, 0)))
    in_specs.append(pl.BlockSpec(wf.shape, lambda b, n: (0, 0)))
    in_specs.append(pl.BlockSpec(bf.shape, lambda b, n: (0, 0)))
    in_specs.append(pl.BlockSpec((1, tile_n, in_ch), lambda b, n: (b, n, 0)))

    out_specs = [
        pl.BlockSpec((1, in_ch, out_ch), lambda b, n: (b, 0, 0)),   # W^T
        pl.BlockSpec((1, 1, out_ch), lambda b, n: (b, 0, 0)),       # bias
        pl.BlockSpec((1, tile_n, out_ch), lambda b, n: (b, n, 0)),  # y (lane-dense)
    ]
    out_shape = [
        jax.ShapeDtypeStruct((B, in_ch, out_ch), jnp.float32),
        jax.ShapeDtypeStruct((B, 1, out_ch), jnp.float32),
        jax.ShapeDtypeStruct((B, N, out_ch), x.dtype),
    ]

    # B=2 gives >=2 parallel grid steps for v7x's two TensorCores.
    # (If B==1 and N is large, shrink tile_n so the n-axis supplies parallel work.)
    wt_t, biases, y = pl.pallas_call(
        _make_fused_kernel(len(fc_layers), in_ch, out_ch),
        grid=(B, nt),
        in_specs=in_specs,
        out_specs=out_specs,
        out_shape=out_shape,
        scratch_shapes=[pltpu.VMEM((in_ch, out_ch), jnp.float32),
                        pltpu.VMEM((1, out_ch), jnp.float32)],
        compiler_params=pltpu.CompilerParams(
            dimension_semantics=("parallel", "arbitrary")),
    )(*flat_inputs)

    # Present weights in PyTorch's (B, out_ch, in_ch) layout.  This tiny (32 KB)
    # swapaxes is output formatting only -- the y compute path above consumed W^T
    # directly in VMEM, so no transpose feeds any matmul or crosses HBM twice.
    weights = jnp.swapaxes(wt_t, -1, -2)
    return weights, biases, y


# ----------------------------------------------------------------------------
# One-time parameter prep: permute wf/bf columns so the MLP emits W^T directly
# ----------------------------------------------------------------------------
def prepare_params_for_kernel(params, in_ch, out_ch):
    """Column-permute the final hyper layer so output index p = i*out_ch + o
    holds W[o, i] (i.e. W^T row-major).  Pure layout plumbing, done once."""
    def permute_cols(m):
        rows = m.shape[0]
        w_part = m[:, :in_ch * out_ch].reshape(rows, out_ch, in_ch)
        w_part = jnp.swapaxes(w_part, 1, 2).reshape(rows, in_ch * out_ch)
        return jnp.concatenate([w_part, m[:, in_ch * out_ch:]], axis=1)
    return {
        "fc_layers": params["fc_layers"],
        "wf": permute_cols(params["wf"]),
        "bf": permute_cols(params["bf"]),
    }


# ----------------------------------------------------------------------------
# Deterministic parameter init mirroring FCBlock / last_hyper_layer_init
# ----------------------------------------------------------------------------
def init_hyperlinear_params(key, in_ch, out_ch, hyper_in_ch,
                            hyper_num_hidden_layers, hyper_hidden_ch):
    P = in_ch * out_ch + out_ch
    layer_dims = ([(hyper_in_ch, hyper_hidden_ch)]
                  + [(hyper_hidden_ch, hyper_hidden_ch)] * hyper_num_hidden_layers)
    keys = jax.random.split(key, 2 * (len(layer_dims) + 1))
    ki = 0
    fc_layers = []
    for (fan_in, fan_out) in layer_dims:
        # kaiming_normal_(fan_in, relu) -- weights stored pre-transposed (in, out)
        std = jnp.sqrt(2.0 / fan_in)
        w = std * jax.random.normal(keys[ki], (fan_in, fan_out), jnp.float32); ki += 1
        bound = 1.0 / jnp.sqrt(jnp.float32(fan_in))
        b = jax.random.uniform(keys[ki], (1, fan_out), jnp.float32, -bound, bound); ki += 1
        g = jnp.ones((1, fan_out), jnp.float32)     # LayerNorm gamma
        be = jnp.zeros((1, fan_out), jnp.float32)   # LayerNorm beta
        fc_layers.append((w, b, g, be))
    # final (outermost) Linear: kaiming_normal_ then *0.1  (last_hyper_layer_init)
    fan_in = hyper_hidden_ch
    std = jnp.sqrt(2.0 / fan_in) * 0.1
    wf = std * jax.random.normal(keys[ki], (fan_in, P), jnp.float32); ki += 1
    bound = 1.0 / jnp.sqrt(jnp.float32(fan_in))
    bf = jax.random.uniform(keys[ki], (1, P), jnp.float32, -bound, bound)
    return {"fc_layers": fc_layers, "wf": wf, "bf": bf}


# ----------------------------------------------------------------------------
# Pure-JAX reference (uses the original, un-permuted parameters)
# ----------------------------------------------------------------------------
def _reference_forward(z, x, params, in_ch, out_ch):
    h = z
    for (w, b, g, be) in params["fc_layers"]:
        h = h @ w + b
        mu = h.mean(-1, keepdims=True)
        var = ((h - mu) ** 2).mean(-1, keepdims=True)
        h = (h - mu) / jnp.sqrt(var + LN_EPS) * g + be
        h = jnp.maximum(h, 0.0)
    hypo = h @ params["wf"] + params["bf"]
    B = hypo.shape[0]
    w_ = hypo[:, :in_ch * out_ch].reshape(B, out_ch, in_ch)
    b_ = hypo[:, in_ch * out_ch:].reshape(B, 1, out_ch)
    y_ = jnp.einsum("bni,boi->bno", x, w_) + b_
    return w_, b_, y_


if __name__ == "__main__":
    B = 2                       # batch of hypernetwork inputs (e.g. latent codes)
    IN_CH, OUT_CH = 32, 128     # predicted linear layer dims (small SRN config)
    HYPER_IN_CH = 8
    HYPER_NUM_HIDDEN_LAYERS = 1
    HYPER_HIDDEN_CH = 64
    N = 256                     # points the predicted BatchLinear is applied to

    key = jax.random.PRNGKey(0)
    k_params, k_z, k_x = jax.random.split(key, 3)

    params = init_hyperlinear_params(k_params, IN_CH, OUT_CH, HYPER_IN_CH,
                                     HYPER_NUM_HIDDEN_LAYERS, HYPER_HIDDEN_CH)
    hyper_input = jax.random.normal(k_z, (B, HYPER_IN_CH), jnp.float32)
    x = jax.random.normal(k_x, (B, N, IN_CH), jnp.float32)

    # one-time layout prep (free under jit; tiny otherwise)
    kparams = prepare_params_for_kernel(params, IN_CH, OUT_CH)

    # Fused HyperLinear.forward + BatchLinear.forward.
    # TODO(synk): PyTorch returns an nn.Module (BatchLinear); here we return its
    # parameters (weights, biases) alongside the applied output y.
    weights, biases, y = hyper_linear_batch_apply(hyper_input, x, kparams,
                                                  IN_CH, OUT_CH)
    jax.block_until_ready((weights, biases, y))

    assert weights.shape == (B, OUT_CH, IN_CH)
    assert biases.shape == (B, 1, OUT_CH)
    assert y.shape == (B, N, OUT_CH)
    assert bool(jnp.all(jnp.isfinite(weights)))
    assert bool(jnp.all(jnp.isfinite(biases)))
    assert bool(jnp.all(jnp.isfinite(y)))

    # correctness vs pure-JAX reference
    w_ref, b_ref, y_ref = _reference_forward(hyper_input, x, params, IN_CH, OUT_CH)
    assert bool(jnp.allclose(weights, w_ref, atol=1e-4, rtol=1e-4))
    assert bool(jnp.allclose(biases, b_ref, atol=1e-4, rtol=1e-4))
    assert bool(jnp.allclose(y, y_ref, atol=1e-3, rtol=1e-3))

    print("KERNEL_OK")
</pallas_src>

<mosaic_0001>
module attributes {stable_mosaic.version = 11 : i64} {
  func.func @kernel(%arg0: i32, %arg1: i32, %arg2: memref<1x1x8xf32, #tpu.memory_space<vmem>>, %arg3: memref<8x64xf32, #tpu.memory_space<vmem>>, %arg4: memref<1x64xf32, #tpu.memory_space<vmem>>, %arg5: memref<1x64xf32, #tpu.memory_space<vmem>>, %arg6: memref<1x64xf32, #tpu.memory_space<vmem>>, %arg7: memref<64x64xf32, #tpu.memory_space<vmem>>, %arg8: memref<1x64xf32, #tpu.memory_space<vmem>>, %arg9: memref<1x64xf32, #tpu.memory_space<vmem>>, %arg10: memref<1x64xf32, #tpu.memory_space<vmem>>, %arg11: memref<64x4224xf32, #tpu.memory_space<vmem>>, %arg12: memref<1x4224xf32, #tpu.memory_space<vmem>>, %arg13: memref<1x256x32xf32, #tpu.memory_space<vmem>>, %arg14: memref<1x32x128xf32, #tpu.memory_space<vmem>>, %arg15: memref<1x1x128xf32, #tpu.memory_space<vmem>>, %arg16: memref<1x256x128xf32, #tpu.memory_space<vmem>>, %arg17: memref<32x128xf32, #tpu.memory_space<vmem>>, %arg18: memref<1x128xf32, #tpu.memory_space<vmem>>) attributes {dimension_semantics = [#tpu.dimension_semantics<parallel>, #tpu.dimension_semantics<arbitrary>], iteration_bounds = array<i64: 2, 1>, scalar_prefetch = 0 : i64, scratch_operands = 2 : i64, tpu.core_type = #tpu.core_type<tc>, window_params = [{transform_indices = @transform_0, window_bounds = array<i64: 1, 1, 8>}, {pipeline_mode = #tpu.pipeline_mode<synchronous>, transform_indices = @transform_1, window_bounds = array<i64: 8, 64>}, {pipeline_mode = #tpu.pipeline_mode<synchronous>, transform_indices = @transform_2, window_bounds = array<i64: 1, 64>}, {pipeline_mode = #tpu.pipeline_mode<synchronous>, transform_indices = @transform_3, window_bounds = array<i64: 1, 64>}, {pipeline_mode = #tpu.pipeline_mode<synchronous>, transform_indices = @transform_4, window_bounds = array<i64: 1, 64>}, {pipeline_mode = #tpu.pipeline_mode<synchronous>, transform_indices = @transform_5, window_bounds = array<i64: 64, 64>}, {pipeline_mode = #tpu.pipeline_mode<synchronous>, transform_indices = @transform_6, window_bounds = array<i64: 1, 64>}, {pipeline_mode = #tpu.pipeline_mode<synchronous>, transform_indices = @transform_7, window_bounds = array<i64: 1, 64>}, {pipeline_mode = #tpu.pipeline_mode<synchronous>, transform_indices = @transform_8, window_bounds = array<i64: 1, 64>}, {pipeline_mode = #tpu.pipeline_mode<synchronous>, transform_indices = @transform_9, window_bounds = array<i64: 64, 4224>}, {pipeline_mode = #tpu.pipeline_mode<synchronous>, transform_indices = @transform_10, window_bounds = array<i64: 1, 4224>}, {transform_indices = @transform_11, window_bounds = array<i64: 1, 256, 32>}, {transform_indices = @transform_12, window_bounds = array<i64: 1, 32, 128>}, {transform_indices = @transform_13, window_bounds = array<i64: 1, 1, 128>}, {transform_indices = @transform_14, window_bounds = array<i64: 1, 256, 128>}]} {
    %c0_i32 = arith.constant 0 : i32
    %0 = arith.cmpi eq, %arg1, %c0_i32 : i32
    %1 = arith.extui %0 : i1 to i32
    %c0_i32_0 = arith.constant 0 : i32
    %2 = arith.cmpi ne, %1, %c0_i32_0 : i32
    scf.if %2 {
      %c0_10 = arith.constant 0 : index
      %c0_11 = arith.constant 0 : index
      %c0_12 = arith.constant 0 : index
      %13 = vector.load %arg2[%c0_10, %c0_11, %c0_12] : memref<1x1x8xf32, #tpu.memory_space<vmem>>, vector<1x1x8xf32>
      %14 = vector.shape_cast %13 : vector<1x1x8xf32> to vector<1x8xf32>
      %c0_13 = arith.constant 0 : index
      %c0_14 = arith.constant 0 : index
      %15 = vector.load %arg3[%c0_13, %c0_14] : memref<8x64xf32, #tpu.memory_space<vmem>>, vector<8x64xf32>
      %cst_15 = arith.constant dense<0.000000e+00> : vector<1x64xf32>
      %16 = tpu.matmul %14, %15, %cst_15 {dimension_numbers = #tpu.dot_dimension_numbers<[1], [0], [0], [1], [0, 0, 1, 1], [], []>} : vector<1x8xf32>, vector<8x64xf32>, vector<1x64xf32> -> vector<1x64xf32>
      %c0_16 = arith.constant 0 : index
      %c0_17 = arith.constant 0 : index
      %17 = vector.load %arg4[%c0_16, %c0_17] : memref<1x64xf32, #tpu.memory_space<vmem>>, vector<1x64xf32>
      %18 = arith.addf %16, %17 : vector<1x64xf32>
      %cst_18 = arith.constant dense<0.000000e+00> : vector<1xf32>
      %19 = vector.multi_reduction <add>, %18, %cst_18 [1] : vector<1x64xf32> to vector<1xf32>
      %20 = vector.shape_cast %19 : vector<1xf32> to vector<1x1xf32>
      %cst_19 = arith.constant 6.400000e+01 : f32
      %21 = vector.broadcast %cst_19 : f32 to vector<1x1xf32>
      %22 = arith.divf %20, %21 : vector<1x1xf32>
      %23 = vector.broadcast %22 : vector<1x1xf32> to vector<1x64xf32>
      %24 = arith.subf %18, %23 : vector<1x64xf32>
      %25 = arith.mulf %24, %24 : vector<1x64xf32>
      %cst_20 = arith.constant dense<0.000000e+00> : vector<1xf32>
      %26 = vector.multi_reduction <add>, %25, %cst_20 [1] : vector<1x64xf32> to vector<1xf32>
      %27 = vector.shape_cast %26 : vector<1xf32> to vector<1x1xf32>
      %cst_21 = arith.constant 6.400000e+01 : f32
      %28 = vector.broadcast %cst_21 : f32 to vector<1x1xf32>
      %29 = arith.divf %27, %28 : vector<1x1xf32>
      %30 = vector.broadcast %22 : vector<1x1xf32> to vector<1x64xf32>
      %31 = arith.subf %18, %30 : vector<1x64xf32>
      %cst_22 = arith.constant 9.99999974E-6 : f32
      %32 = vector.broadcast %cst_22 : f32 to vector<1x1xf32>
      %33 = arith.addf %29, %32 : vector<1x1xf32>
      %34 = math.rsqrt %33 : vector<1x1xf32>
      %35 = vector.broadcast %34 : vector<1x1xf32> to vector<1x64xf32>
      %36 = arith.mulf %31, %35 : vector<1x64xf32>
      %c0_23 = arith.constant 0 : index
      %c0_24 = arith.constant 0 : index
      %37 = vector.load %arg5[%c0_23, %c0_24] : memref<1x64xf32, #tpu.memory_space<vmem>>, vector<1x64xf32>
      %38 = arith.mulf %36, %37 : vector<1x64xf32>
      %c0_25 = arith.constant 0 : index
      %c0_26 = arith.constant 0 : index
      %39 = vector.load %arg6[%c0_25, %c0_26] : memref<1x64xf32, #tpu.memory_space<vmem>>, vector<1x64xf32>
      %40 = arith.addf %38, %39 : vector<1x64xf32>
      %cst_27 = arith.constant 0.000000e+00 : f32
      %41 = vector.broadcast %cst_27 : f32 to vector<1x64xf32>
      %42 = arith.maximumf %40, %41 : vector<1x64xf32>
      %c0_28 = arith.constant 0 : index
      %c0_29 = arith.constant 0 : index
      %43 = vector.load %arg7[%c0_28, %c0_29] : memref<64x64xf32, #tpu.memory_space<vmem>>, vector<64x64xf32>
      %cst_30 = arith.constant dense<0.000000e+00> : vector<1x64xf32>
      %44 = tpu.matmul %42, %43, %cst_30 {dimension_numbers = #tpu.dot_dimension_numbers<[1], [0], [0], [1], [0, 0, 1, 1], [], []>} : vector<1x64xf32>, vector<64x64xf32>, vector<1x64xf32> -> vector<1x64xf32>
      %c0_31 = arith.constant 0 : index
      %c0_32 = arith.constant 0 : index
      %45 = vector.load %arg8[%c0_31, %c0_32] : memref<1x64xf32, #tpu.memory_space<vmem>>, vector<1x64xf32>
      %46 = arith.addf %44, %45 : vector<1x64xf32>
      %cst_33 = arith.constant dense<0.000000e+00> : vector<1xf32>
      %47 = vector.multi_reduction <add>, %46, %cst_33 [1] : vector<1x64xf32> to vector<1xf32>
      %48 = vector.shape_cast %47 : vector<1xf32> to vector<1x1xf32>
      %cst_34 = arith.constant 6.400000e+01 : f32
      %49 = vector.broadcast %cst_34 : f32 to vector<1x1xf32>
      %50 = arith.divf %48, %49 : vector<1x1xf32>
      %51 = vector.broadcast %50 : vector<1x1xf32> to vector<1x64xf32>
      %52 = arith.subf %46, %51 : vector<1x64xf32>
      %53 = arith.mulf %52, %52 : vector<1x64xf32>
      %cst_35 = arith.constant dense<0.000000e+00> : vector<1xf32>
      %54 = vector.multi_reduction <add>, %53, %cst_35 [1] : vector<1x64xf32> to vector<1xf32>
      %55 = vector.shape_cast %54 : vector<1xf32> to vector<1x1xf32>
      %cst_36 = arith.constant 6.400000e+01 : f32
      %56 = vector.broadcast %cst_36 : f32 to vector<1x1xf32>
      %57 = arith.divf %55, %56 : vector<1x1xf32>
      %58 = vector.broadcast %50 : vector<1x1xf32> to vector<1x64xf32>
      %59 = arith.subf %46, %58 : vector<1x64xf32>
      %cst_37 = arith.constant 9.99999974E-6 : f32
      %60 = vector.broadcast %cst_37 : f32 to vector<1x1xf32>
      %61 = arith.addf %57, %60 : vector<1x1xf32>
      %62 = math.rsqrt %61 : vector<1x1xf32>
      %63 = vector.broadcast %62 : vector<1x1xf32> to vector<1x64xf32>
      %64 = arith.mulf %59, %63 : vector<1x64xf32>
      %c0_38 = arith.constant 0 : index
      %c0_39 = arith.constant 0 : index
      %65 = vector.load %arg9[%c0_38, %c0_39] : memref<1x64xf32, #tpu.memory_space<vmem>>, vector<1x64xf32>
      %66 = arith.mulf %64, %65 : vector<1x64xf32>
      %c0_40 = arith.constant 0 : index
      %c0_41 = arith.constant 0 : index
      %67 = vector.load %arg10[%c0_40, %c0_41] : memref<1x64xf32, #tpu.memory_space<vmem>>, vector<1x64xf32>
      %68 = arith.addf %66, %67 : vector<1x64xf32>
      %cst_42 = arith.constant 0.000000e+00 : f32
      %69 = vector.broadcast %cst_42 : f32 to vector<1x64xf32>
      %70 = arith.maximumf %68, %69 : vector<1x64xf32>
      %c0_43 = arith.constant 0 : index
      %c0_44 = arith.constant 0 : index
      %71 = vector.load %arg11[%c0_43, %c0_44] : memref<64x4224xf32, #tpu.memory_space<vmem>>, vector<64x4224xf32>
      %cst_45 = arith.constant dense<0.000000e+00> : vector<1x4224xf32>
      %72 = tpu.matmul %70, %71, %cst_45 {dimension_numbers = #tpu.dot_dimension_numbers<[1], [0], [0], [1], [0, 0, 1, 1], [], []>} : vector<1x64xf32>, vector<64x4224xf32>, vector<1x4224xf32> -> vector<1x4224xf32>
      %c0_46 = arith.constant 0 : index
      %c0_47 = arith.constant 0 : index
      %73 = vector.load %arg12[%c0_46, %c0_47] : memref<1x4224xf32, #tpu.memory_space<vmem>>, vector<1x4224xf32>
      %74 = arith.addf %72, %73 : vector<1x4224xf32>
      %75 = vector.extract_strided_slice %74 {offsets = [0, 0], sizes = [1, 128], strides = [1, 1]} : vector<1x4224xf32> to vector<1x128xf32>
      %c0_48 = arith.constant 0 : index
      %c0_49 = arith.constant 0 : index
      %76 = vector.load %arg17[%c0_48, %c0_49] : memref<32x128xf32, #tpu.memory_space<vmem>>, vector<1x128xf32>
      tpu.vector_store %arg17[%c0_48, %c0_49], %75 {strides = array<i32>} : memref<32x128xf32, #tpu.memory_space<vmem>>, vector<1x128xf32>,
      %77 = vector.extract_strided_slice %74 {offsets = [0, 128], sizes = [1, 128], strides = [1, 1]} : vector<1x4224xf32> to vector<1x128xf32>
      %c1 = arith.constant 1 : index
      %c0_50 = arith.constant 0 : index
      %78 = vector.load %arg17[%c1, %c0_50] : memref<32x128xf32, #tpu.memory_space<vmem>>, vector<1x128xf32>
      tpu.vector_store %arg17[%c1, %c0_50], %77 {strides = array<i32>} : memref<32x128xf32, #tpu.memory_space<vmem>>, vector<1x128xf32>,
      %79 = vector.extract_strided_slice %74 {offsets = [0, 256], sizes = [1, 128], strides = [1, 1]} : vector<1x4224xf32> to vector<1x128xf32>
      %c2 = arith.constant 2 : index
      %c0_51 = arith.constant 0 : index
      %80 = vector.load %arg17[%c2, %c0_51] : memref<32x128xf32, #tpu.memory_space<vmem>>, vector<1x128xf32>
      tpu.vector_store %arg17[%c2, %c0_51], %79 {strides = array<i32>} : memref<32x128xf32, #tpu.memory_space<vmem>>, vector<1x128xf32>,
      %81 = vector.extract_strided_slice %74 {offsets = [0, 384], sizes = [1, 128], strides = [1, 1]} : vector<1x4224xf32> to vector<1x128xf32>
      %c3 = arith.constant 3 : index
      %c0_52 = arith.constant 0 : index
      %82 = vector.load %arg17[%c3, %c0_52] : memref<32x128xf32, #tpu.memory_space<vmem>>, vector<1x128xf32>
      tpu.vector_store %arg17[%c3, %c0_52], %81 {strides = array<i32>} : memref<32x128xf32, #tpu.memory_space<vmem>>, vector<1x128xf32>,
      %83 = vector.extract_strided_slice %74 {offsets = [0, 512], sizes = [1, 128], strides = [1, 1]} : vector<1x4224xf32> to vector<1x128xf32>
      %c4 = arith.constant 4 : index
      %c0_53 = arith.constant 0 : index
      %84 = vector.load %arg17[%c4, %c0_53] : memref<32x128xf32, #tpu.memory_space<vmem>>, vector<1x128xf32>
      tpu.vector_store %arg17[%c4, %c0_53], %83 {strides = array<i32>} : memref<32x128xf32, #tpu.memory_space<vmem>>, vector<1x128xf32>,
      %85 = vector.extract_strided_slice %74 {offsets = [0, 640], sizes = [1, 128], strides = [1, 1]} : vector<1x4224xf32> to vector<1x128xf32>
      %c5 = arith.constant 5 : index
      %c0_54 = arith.constant 0 : index
      %86 = vector.load %arg17[%c5, %c0_54] : memref<32x128xf32, #tpu.memory_space<vmem>>, vector<1x128xf32>
      tpu.vector_store %arg17[%c5, %c0_54], %85 {strides = array<i32>} : memref<32x128xf32, #tpu.memory_space<vmem>>, vector<1x128xf32>,
      %87 = vector.extract_strided_slice %74 {offsets = [0, 768], sizes = [1, 128], strides = [1, 1]} : vector<1x4224xf32> to vector<1x128xf32>
      %c6 = arith.constant 6 : index
      %c0_55 = arith.constant 0 : index
      %88 = vector.load %arg17[%c6, %c0_55] : memref<32x128xf32, #tpu.memory_space<vmem>>, vector<1x128xf32>
      tpu.vector_store %arg17[%c6, %c0_55], %87 {strides = array<i32>} : memref<32x128xf32, #tpu.memory_space<vmem>>, vector<1x128xf32>,
      %89 = vector.extract_strided_slice %74 {offsets = [0, 896], sizes = [1, 128], strides = [1, 1]} : vector<1x4224xf32> to vector<1x128xf32>
      %c7 = arith.constant 7 : index
      %c0_56 = arith.constant 0 : index
      %90 = vector.load %arg17[%c7, %c0_56] : memref<32x128xf32, #tpu.memory_space<vmem>>, vector<1x128xf32>
      tpu.vector_store %arg17[%c7, %c0_56], %89 {strides = array<i32>} : memref<32x128xf32, #tpu.memory_space<vmem>>, vector<1x128xf32>,
      %91 = vector.extract_strided_slice %74 {offsets = [0, 1024], sizes = [1, 128], strides = [1, 1]} : vector<1x4224xf32> to vector<1x128xf32>
      %c8 = arith.constant 8 : index
      %c0_57 = arith.constant 0 : index
      %92 = vector.load %arg17[%c8, %c0_57] : memref<32x128xf32, #tpu.memory_space<vmem>>, vector<1x128xf32>
      tpu.vector_store %arg17[%c8, %c0_57], %91 {strides = array<i32>} : memref<32x128xf32, #tpu.memory_space<vmem>>, vector<1x128xf32>,
      %93 = vector.extract_strided_slice %74 {offsets = [0, 1152], sizes = [1, 128], strides = [1, 1]} : vector<1x4224xf32> to vector<1x128xf32>
      %c9 = arith.constant 9 : index
      %c0_58 = arith.constant 0 : index
      %94 = vector.load %arg17[%c9, %c0_58] : memref<32x128xf32, #tpu.memory_space<vmem>>, vector<1x128xf32>
      tpu.vector_store %arg17[%c9, %c0_58], %93 {strides = array<i32>} : memref<32x128xf32, #tpu.memory_space<vmem>>, vector<1x128xf32>,
      %95 = vector.extract_strided_slice %74 {offsets = [0, 1280], sizes = [1, 128], strides = [1, 1]} : vector<1x4224xf32> to vector<1x128xf32>
      %c10 = arith.constant 10 : index
      %c0_59 = arith.constant 0 : index
      %96 = vector.load %arg17[%c10, %c0_59] : memref<32x128xf32, #tpu.memory_space<vmem>>, vector<1x128xf32>
      tpu.vector_store %arg17[%c10, %c0_59], %95 {strides = array<i32>} : memref<32x128xf32, #tpu.memory_space<vmem>>, vector<1x128xf32>,
      %97 = vector.extract_strided_slice %74 {offsets = [0, 1408], sizes = [1, 128], strides = [1, 1]} : vector<1x4224xf32> to vector<1x128xf32>
      %c11 = arith.constant 11 : index
      %c0_60 = arith.constant 0 : index
      %98 = vector.load %arg17[%c11, %c0_60] : memref<32x128xf32, #tpu.memory_space<vmem>>, vector<1x128xf32>
      tpu.vector_store %arg17[%c11, %c0_60], %97 {strides = array<i32>} : memref<32x128xf32, #tpu.memory_space<vmem>>, vector<1x128xf32>,
      %99 = vector.extract_strided_slice %74 {offsets = [0, 1536], sizes = [1, 128], strides = [1, 1]} : vector<1x4224xf32> to vector<1x128xf32>
      %c12 = arith.constant 12 : index
      %c0_61 = arith.constant 0 : index
      %100 = vector.load %arg17[%c12, %c0_61] : memref<32x128xf32, #tpu.memory_space<vmem>>, vector<1x128xf32>
      tpu.vector_store %arg17[%c12, %c0_61], %99 {strides = array<i32>} : memref<32x128xf32, #tpu.memory_space<vmem>>, vector<1x128xf32>,
      %101 = vector.extract_strided_slice %74 {offsets = [0, 1664], sizes = [1, 128], strides = [1, 1]} : vector<1x4224xf32> to vector<1x128xf32>
      %c13 = arith.constant 13 : index
      %c0_62 = arith.constant 0 : index
      %102 = vector.load %arg17[%c13, %c0_62] : memref<32x128xf32, #tpu.memory_space<vmem>>, vector<1x128xf32>
      tpu.vector_store %arg17[%c13, %c0_62], %101 {strides = array<i32>} : memref<32x128xf32, #tpu.memory_space<vmem>>, vector<1x128xf32>,
      %103 = vector.extract_strided_slice %74 {offsets = [0, 1792], sizes = [1, 128], strides = [1, 1]} : vector<1x4224xf32> to vector<1x128xf32>
      %c14 = arith.constant 14 : index
      %c0_63 = arith.constant 0 : index
      %104 = vector.load %arg17[%c14, %c0_63] : memref<32x128xf32, #tpu.memory_space<vmem>>, vector<1x128xf32>
      tpu.vector_store %arg17[%c14, %c0_63], %103 {strides = array<i32>} : memref<32x128xf32, #tpu.memory_space<vmem>>, vector<1x128xf32>,
      %105 = vector.extract_strided_slice %74 {offsets = [0, 1920], sizes = [1, 128], strides = [1, 1]} : vector<1x4224xf32> to vector<1x128xf32>
      %c15 = arith.constant 15 : index
      %c0_64 = arith.constant 0 : index
      %106 = vector.load %arg17[%c15, %c0_64] : memref<32x128xf32, #tpu.memory_space<vmem>>, vector<1x128xf32>
      tpu.vector_store %arg17[%c15, %c0_64], %105 {strides = array<i32>} : memref<32x128xf32, #tpu.memory_space<vmem>>, vector<1x128xf32>,
      %107 = vector.extract_strided_slice %74 {offsets = [0, 2048], sizes = [1, 128], strides = [1, 1]} : vector<1x4224xf32> to vector<1x128xf32>
      %c16 = arith.constant 16 : index
      %c0_65 = arith.constant 0 : index
      %108 = vector.load %arg17[%c16, %c0_65] : memref<32x128xf32, #tpu.memory_space<vmem>>, vector<1x128xf32>
      tpu.vector_store %arg17[%c16, %c0_65], %107 {strides = array<i32>} : memref<32x128xf32, #tpu.memory_space<vmem>>, vector<1x128xf32>,
      %109 = vector.extract_strided_slice %74 {offsets = [0, 2176], sizes = [1, 128], strides = [1, 1]} : vector<1x4224xf32> to vector<1x128xf32>
      %c17 = arith.constant 17 : index
      %c0_66 = arith.constant 0 : index
      %110 = vector.load %arg17[%c17, %c0_66] : memref<32x128xf32, #tpu.memory_space<vmem>>, vector<1x128xf32>
      tpu.vector_store %arg17[%c17, %c0_66], %109 {strides = array<i32>} : memref<32x128xf32, #tpu.memory_space<vmem>>, vector<1x128xf32>,
      %111 = vector.extract_strided_slice %74 {offsets = [0, 2304], sizes = [1, 128], strides = [1, 1]} : vector<1x4224xf32> to vector<1x128xf32>
      %c18 = arith.constant 18 : index
      %c0_67 = arith.constant 0 : index
      %112 = vector.load %arg17[%c18, %c0_67] : memref<32x128xf32, #tpu.memory_space<vmem>>, vector<1x128xf32>
      tpu.vector_store %arg17[%c18, %c0_67], %111 {strides = array<i32>} : memref<32x128xf32, #tpu.memory_space<vmem>>, vector<1x128xf32>,
      %113 = vector.extract_strided_slice %74 {offsets = [0, 2432], sizes = [1, 128], strides = [1, 1]} : vector<1x4224xf32> to vector<1x128xf32>
      %c19 = arith.constant 19 : index
      %c0_68 = arith.constant 0 : index
      %114 = vector.load %arg17[%c19, %c0_68] : memref<32x128xf32, #tpu.memory_space<vmem>>, vector<1x128xf32>
      tpu.vector_store %arg17[%c19, %c0_68], %113 {strides = array<i32>} : memref<32x128xf32, #tpu.memory_space<vmem>>, vector<1x128xf32>,
      %115 = vector.extract_strided_slice %74 {offsets = [0, 2560], sizes = [1, 128], strides = [1, 1]} : vector<1x4224xf32> to vector<1x128xf32>
      %c20 = arith.constant 20 : index
      %c0_69 = arith.constant 0 : index
      %116 = vector.load %arg17[%c20, %c0_69] : memref<32x128xf32, #tpu.memory_space<vmem>>, vector<1x128xf32>
      tpu.vector_store %arg17[%c20, %c0_69], %115 {strides = array<i32>} : memref<32x128xf32, #tpu.memory_space<vmem>>, vector<1x128xf32>,
      %117 = vector.extract_strided_slice %74 {offsets = [0, 2688], sizes = [1, 128], strides = [1, 1]} : vector<1x4224xf32> to vector<1x128xf32>
      %c21 = arith.constant 21 : index
      %c0_70 = arith.constant 0 : index
      %118 = vector.load %arg17[%c21, %c0_70] : memref<32x128xf32, #tpu.memory_space<vmem>>, vector<1x128xf32>
      tpu.vector_store %arg17[%c21, %c0_70], %117 {strides = array<i32>} : memref<32x128xf32, #tpu.memory_space<vmem>>, vector<1x128xf32>,
      %119 = vector.extract_strided_slice %74 {offsets = [0, 2816], sizes = [1, 128], strides = [1, 1]} : vector<1x4224xf32> to vector<1x128xf32>
      %c22 = arith.constant 22 : index
      %c0_71 = arith.constant 0 : index
      %120 = vector.load %arg17[%c22, %c0_71] : memref<32x128xf32, #tpu.memory_space<vmem>>, vector<1x128xf32>
      tpu.vector_store %arg17[%c22, %c0_71], %119 {strides = array<i32>} : memref<32x128xf32, #tpu.memory_space<vmem>>, vector<1x128xf32>,
      %121 = vector.extract_strided_slice %74 {offsets = [0, 2944], sizes = [1, 128], strides = [1, 1]} : vector<1x4224xf32> to vector<1x128xf32>
      %c23 = arith.constant 23 : index
      %c0_72 = arith.constant 0 : index
      %122 = vector.load %arg17[%c23, %c0_72] : memref<32x128xf32, #tpu.memory_space<vmem>>, vector<1x128xf32>
      tpu.vector_store %arg17[%c23, %c0_72], %121 {strides = array<i32>} : memref<32x128xf32, #tpu.memory_space<vmem>>, vector<1x128xf32>,
      %123 = vector.extract_strided_slice %74 {offsets = [0, 3072], sizes = [1, 128], strides = [1, 1]} : vector<1x4224xf32> to vector<1x128xf32>
      %c24 = arith.constant 24 : index
      %c0_73 = arith.constant 0 : index
      %124 = vector.load %arg17[%c24, %c0_73] : memref<32x128xf32, #tpu.memory_space<vmem>>, vector<1x128xf32>
      tpu.vector_store %arg17[%c24, %c0_73], %123 {strides = array<i32>} : memref<32x128xf32, #tpu.memory_space<vmem>>, vector<1x128xf32>,
      %125 = vector.extract_strided_slice %74 {offsets = [0, 3200], sizes = [1, 128], strides = [1, 1]} : vector<1x4224xf32> to vector<1x128xf32>
      %c25 = arith.constant 25 : index
      %c0_74 = arith.constant 0 : index
      %126 = vector.load %arg17[%c25, %c0_74] : memref<32x128xf32, #tpu.memory_space<vmem>>, vector<1x128xf32>
      tpu.vector_store %arg17[%c25, %c0_74], %125 {strides = array<i32>} : memref<32x128xf32, #tpu.memory_space<vmem>>, vector<1x128xf32>,
      %127 = vector.extract_strided_slice %74 {offsets = [0, 3328], sizes = [1, 128], strides = [1, 1]} : vector<1x4224xf32> to vector<1x128xf32>
      %c26 = arith.constant 26 : index
      %c0_75 = arith.constant 0 : index
      %128 = vector.load %arg17[%c26, %c0_75] : memref<32x128xf32, #tpu.memory_space<vmem>>, vector<1x128xf32>
      tpu.vector_store %arg17[%c26, %c0_75], %127 {strides = array<i32>} : memref<32x128xf32, #tpu.memory_space<vmem>>, vector<1x128xf32>,
      %129 = vector.extract_strided_slice %74 {offsets = [0, 3456], sizes = [1, 128], strides = [1, 1]} : vector<1x4224xf32> to vector<1x128xf32>
      %c27 = arith.constant 27 : index
      %c0_76 = arith.constant 0 : index
      %130 = vector.load %arg17[%c27, %c0_76] : memref<32x128xf32, #tpu.memory_space<vmem>>, vector<1x128xf32>
      tpu.vector_store %arg17[%c27, %c0_76], %129 {strides = array<i32>} : memref<32x128xf32, #tpu.memory_space<vmem>>, vector<1x128xf32>,
      %131 = vector.extract_strided_slice %74 {offsets = [0, 3584], sizes = [1, 128], strides = [1, 1]} : vector<1x4224xf32> to vector<1x128xf32>
      %c28 = arith.constant 28 : index
      %c0_77 = arith.constant 0 : index
      %132 = vector.load %arg17[%c28, %c0_77] : memref<32x128xf32, #tpu.memory_space<vmem>>, vector<1x128xf32>
      tpu.vector_store %arg17[%c28, %c0_77], %131 {strides = array<i32>} : memref<32x128xf32, #tpu.memory_space<vmem>>, vector<1x128xf32>,
      %133 = vector.extract_strided_slice %74 {offsets = [0, 3712], sizes = [1, 128], strides = [1, 1]} : vector<1x4224xf32> to vector<1x128xf32>
      %c29 = arith.constant 29 : index
      %c0_78 = arith.constant 0 : index
      %134 = vector.load %arg17[%c29, %c0_78] : memref<32x128xf32, #tpu.memory_space<vmem>>, vector<1x128xf32>
      tpu.vector_store %arg17[%c29, %c0_78], %133 {strides = array<i32>} : memref<32x128xf32, #tpu.memory_space<vmem>>, vector<1x128xf32>,
      %135 = vector.extract_strided_slice %74 {offsets = [0, 3840], sizes = [1, 128], strides = [1, 1]} : vector<1x4224xf32> to vector<1x128xf32>
      %c30 = arith.constant 30 : index
      %c0_79 = arith.constant 0 : index
      %136 = vector.load %arg17[%c30, %c0_79] : memref<32x128xf32, #tpu.memory_space<vmem>>, vector<1x128xf32>
      tpu.vector_store %arg17[%c30, %c0_79], %135 {strides = array<i32>} : memref<32x128xf32, #tpu.memory_space<vmem>>, vector<1x128xf32>,
      %137 = vector.extract_strided_slice %74 {offsets = [0, 3968], sizes = [1, 128], strides = [1, 1]} : vector<1x4224xf32> to vector<1x128xf32>
      %c31 = arith.constant 31 : index
      %c0_80 = arith.constant 0 : index
      %138 = vector.load %arg17[%c31, %c0_80] : memref<32x128xf32, #tpu.memory_space<vmem>>, vector<1x128xf32>
      tpu.vector_store %arg17[%c31, %c0_80], %137 {strides = array<i32>} : memref<32x128xf32, #tpu.memory_space<vmem>>, vector<1x128xf32>,
      %139 = vector.extract_strided_slice %74 {offsets = [0, 4096], sizes = [1, 128], strides = [1, 1]} : vector<1x4224xf32> to vector<1x128xf32>
      %c0_81 = arith.constant 0 : index
      %c0_82 = arith.constant 0 : index
      %140 = vector.load %arg18[%c0_81, %c0_82] : memref<1x128xf32, #tpu.memory_space<vmem>>, vector<1x128xf32>
      tpu.vector_store %arg18[%c0_81, %c0_82], %139 {strides = array<i32>} : memref<1x128xf32, #tpu.memory_space<vmem>>, vector<1x128xf32>,
      %c0_83 = arith.constant 0 : index
      %c0_84 = arith.constant 0 : index
      %141 = vector.load %arg17[%c0_83, %c0_84] : memref<32x128xf32, #tpu.memory_space<vmem>>, vector<32x128xf32>
      %c0_85 = arith.constant 0 : index
      %c0_86 = arith.constant 0 : index
      %c0_87 = arith.constant 0 : index
      %142 = vector.load %arg14[%c0_85, %c0_86, %c0_87] : memref<1x32x128xf32, #tpu.memory_space<vmem>>, vector<1x32x128xf32>
      %143 = vector.shape_cast %142 : vector<1x32x128xf32> to vector<32x128xf32>
      %144 = vector.shape_cast %141 : vector<32x128xf32> to vector<1x32x128xf32>
      tpu.vector_store %arg14[%c0_85, %c0_86, %c0_87], %144 {strides = array<i32>} : memref<1x32x128xf32, #tpu.memory_space<vmem>>, vector<1x32x128xf32>,
      %c0_88 = arith.constant 0 : index
      %c0_89 = arith.constant 0 : index
      %145 = vector.load %arg18[%c0_88, %c0_89] : memref<1x128xf32, #tpu.memory_space<vmem>>, vector<1x128xf32>
      %c0_90 = arith.constant 0 : index
      %c0_91 = arith.constant 0 : index
      %c0_92 = arith.constant 0 : index
      %146 = vector.load %arg15[%c0_90, %c0_91, %c0_92] : memref<1x1x128xf32, #tpu.memory_space<vmem>>, vector<1x1x128xf32>
      %147 = vector.shape_cast %146 : vector<1x1x128xf32> to vector<1x128xf32>
      %148 = vector.shape_cast %145 : vector<1x128xf32> to vector<1x1x128xf32>
      tpu.vector_store %arg15[%c0_90, %c0_91, %c0_92], %148 {strides = array<i32>} : memref<1x1x128xf32, #tpu.memory_space<vmem>>, vector<1x1x128xf32>,
    } else {
    }
    %c0 = arith.constant 0 : index
    %c0_1 = arith.constant 0 : index
    %c0_2 = arith.constant 0 : index
    %3 = vector.load %arg13[%c0, %c0_1, %c0_2] : memref<1x256x32xf32, #tpu.memory_space<vmem>>, vector<1x256x32xf32>
    %4 = vector.shape_cast %3 : vector<1x256x32xf32> to vector<256x32xf32>
    %c0_3 = arith.constant 0 : index
    %c0_4 = arith.constant 0 : index
    %5 = vector.load %arg17[%c0_3, %c0_4] : memref<32x128xf32, #tpu.memory_space<vmem>>, vector<32x128xf32>
    %cst = arith.constant dense<0.000000e+00> : vector<256x128xf32>
    %6 = tpu.matmul %4, %5, %cst {dimension_numbers = #tpu.dot_dimension_numbers<[1], [0], [0], [1], [0, 0, 1, 1], [], []>} : vector<256x32xf32>, vector<32x128xf32>, vector<256x128xf32> -> vector<256x128xf32>
    %c0_5 = arith.constant 0 : index
    %c0_6 = arith.constant 0 : index
    %7 = vector.load %arg18[%c0_5, %c0_6] : memref<1x128xf32, #tpu.memory_space<vmem>>, vector<1x128xf32>
    %8 = vector.broadcast %7 : vector<1x128xf32> to vector<256x128xf32>
    %9 = arith.addf %6, %8 : vector<256x128xf32>
    %c0_7 = arith.constant 0 : index
    %c0_8 = arith.constant 0 : index
    %c0_9 = arith.constant 0 : index
    %10 = vector.load %arg16[%c0_7, %c0_8, %c0_9] : memref<1x256x128xf32, #tpu.memory_space<vmem>>, vector<1x256x128xf32>
    %11 = vector.shape_cast %10 : vector<1x256x128xf32> to vector<256x128xf32>
    %12 = vector.shape_cast %9 : vector<256x128xf32> to vector<1x256x128xf32>
    tpu.vector_store %arg16[%c0_7, %c0_8, %c0_9], %12 {strides = array<i32>} : memref<1x256x128xf32, #tpu.memory_space<vmem>>, vector<1x256x128xf32>,
    return
  }
  func.func @transform_0(%arg0: i32, %arg1: i32) -> (i32, i32, i32) {
    %c0_i32 = arith.constant 0 : i32
    %c0_i32_0 = arith.constant 0 : i32
    %c0_i32_1 = arith.constant 0 : i32
    return %arg0, %c0_i32, %c0_i32_0 : i32, i32, i32
  }
  func.func @transform_1(%arg0: i32, %arg1: i32) -> (i32, i32) {
    %c0_i32 = arith.constant 0 : i32
    %c0_i32_0 = arith.constant 0 : i32
    %c0_i32_1 = arith.constant 0 : i32
    return %c0_i32, %c0_i32_0 : i32, i32
  }
  func.func @transform_2(%arg0: i32, %arg1: i32) -> (i32, i32) {
    %c0_i32 = arith.constant 0 : i32
    %c0_i32_0 = arith.constant 0 : i32
    %c0_i32_1 = arith.constant 0 : i32
    return %c0_i32, %c0_i32_0 : i32, i32
  }
  func.func @transform_3(%arg0: i32, %arg1: i32) -> (i32, i32) {
    %c0_i32 = arith.constant 0 : i32
    %c0_i32_0 = arith.constant 0 : i32
    %c0_i32_1 = arith.constant 0 : i32
    return %c0_i32, %c0_i32_0 : i32, i32
  }
  func.func @transform_4(%arg0: i32, %arg1: i32) -> (i32, i32) {
    %c0_i32 = arith.constant 0 : i32
    %c0_i32_0 = arith.constant 0 : i32
    %c0_i32_1 = arith.constant 0 : i32
    return %c0_i32, %c0_i32_0 : i32, i32
  }
  func.func @transform_5(%arg0: i32, %arg1: i32) -> (i32, i32) {
    %c0_i32 = arith.constant 0 : i32
    %c0_i32_0 = arith.constant 0 : i32
    %c0_i32_1 = arith.constant 0 : i32
    return %c0_i32, %c0_i32_0 : i32, i32
  }
  func.func @transform_6(%arg0: i32, %arg1: i32) -> (i32, i32) {
    %c0_i32 = arith.constant 0 : i32
    %c0_i32_0 = arith.constant 0 : i32
    %c0_i32_1 = arith.constant 0 : i32
    return %c0_i32, %c0_i32_0 : i32, i32
  }
  func.func @transform_7(%arg0: i32, %arg1: i32) -> (i32, i32) {
    %c0_i32 = arith.constant 0 : i32
    %c0_i32_0 = arith.constant 0 : i32
    %c0_i32_1 = arith.constant 0 : i32
    return %c0_i32, %c0_i32_0 : i32, i32
  }
  func.func @transform_8(%arg0: i32, %arg1: i32) -> (i32, i32) {
    %c0_i32 = arith.constant 0 : i32
    %c0_i32_0 = arith.constant 0 : i32
    %c0_i32_1 = arith.constant 0 : i32
    return %c0_i32, %c0_i32_0 : i32, i32
  }
  func.func @transform_9(%arg0: i32, %arg1: i32) -> (i32, i32) {
    %c0_i32 = arith.constant 0 : i32
    %c0_i32_0 = arith.constant 0 : i32
    %c0_i32_1 = arith.constant 0 : i32
    return %c0_i32, %c0_i32_0 : i32, i32
  }
  func.func @transform_10(%arg0: i32, %arg1: i32) -> (i32, i32) {
    %c0_i32 = arith.constant 0 : i32
    %c0_i32_0 = arith.constant 0 : i32
    %c0_i32_1 = arith.constant 0 : i32
    return %c0_i32, %c0_i32_0 : i32, i32
  }
  func.func @transform_11(%arg0: i32, %arg1: i32) -> (i32, i32, i32) {
    %c0_i32 = arith.constant 0 : i32
    %c0_i32_0 = arith.constant 0 : i32
    return %arg0, %arg1, %c0_i32 : i32, i32, i32
  }
  func.func @transform_12(%arg0: i32, %arg1: i32) -> (i32, i32, i32) {
    %c0_i32 = arith.constant 0 : i32
    %c0_i32_0 = arith.constant 0 : i32
    %c0_i32_1 = arith.constant 0 : i32
    return %arg0, %c0_i32, %c0_i32_0 : i32, i32, i32
  }
  func.func @transform_13(%arg0: i32, %arg1: i32) -> (i32, i32, i32) {
    %c0_i32 = arith.constant 0 : i32
    %c0_i32_0 = arith.constant 0 : i32
    %c0_i32_1 = arith.constant 0 : i32
    return %arg0, %c0_i32, %c0_i32_0 : i32, i32, i32
  }
  func.func @transform_14(%arg0: i32, %arg1: i32) -> (i32, i32, i32) {
    %c0_i32 = arith.constant 0 : i32
    %c0_i32_0 = arith.constant 0 : i32
    return %arg0, %arg1, %c0_i32 : i32, i32, i32
  }
}

</mosaic_0001>

<bundles_post_ra>
// kernel: tpu_custom_call.1
= control target key start
LH: loop header
LB: loop body
LE: loop exit
PB: predicated region body
PF: predicated region fallthrough
CT: control target
= control target key end

     0   :  { %s5337_s0 = inlined_call_operand.hbm [shape: f32[2,1,8], index: 0, kind: input, shape index: {}]   ;;  %s5338_s1 = inlined_call_operand.hbm [shape: f32[8,64], index: 1, kind: input, shape index: {}]   ;;  %s5339_s2 = inlined_call_operand.hbm [shape: f32[1,64], index: 2, kind: input, shape index: {}]   ;;  %s5340_s3 = inlined_call_operand.hbm [shape: f32[1,64], index: 3, kind: input, shape index: {}]   ;;  %s5341_s4 = inlined_call_operand.hbm [shape: f32[1,64], index: 4, kind: input, shape index: {}]   ;;  %s5342_s5 = inlined_call_operand.hbm [shape: f32[64,64], index: 5, kind: input, shape index: {}]   ;;  %s5343_s6 = inlined_call_operand.hbm [shape: f32[1,64], index: 6, kind: input, shape index: {}]   ;;  %s5344_s7 = inlined_call_operand.hbm [shape: f32[1,64], index: 7, kind: input, shape index: {}]   ;;  %s5345_s8 = inlined_call_operand.hbm [shape: f32[1,64], index: 8, kind: input, shape index: {}]   ;;  %s5346_s9 = inlined_call_operand.hbm [shape: f32[64,4224], index: 9, kind: input, shape index: {}]   ;;  %s5347_s10 = inlined_call_operand.hbm [shape: f32[1,4224], index: 10, kind: input, shape index: {}]   ;;  %s5348_s11 = inlined_call_operand.vmem [shape: f32[2,256,32], index: 11, kind: input, shape index: {}]   ;;  %s5349_s12 = inlined_call_operand.hbm [shape: f32[2,32,128], index: 12, kind: output, shape index: {0}]   ;;  %s5350_s13 = inlined_call_operand.hbm [shape: f32[2,1,128], index: 13, kind: output, shape index: {1}]   ;;  %s5351_s14 = inlined_call_operand.hbm [shape: f32[2,256,128], index: 14, kind: output, shape index: {2}]  }
   0x1   :  { %5365 = sst [smem:[#allocation37_spill]] %s5337_s0 }
   0x2   :  { %5366 = sst [smem:[#allocation38_spill]] %s5338_s1 }
   0x3   :  { %5367 = sst [smem:[#allocation39_spill]] %s5339_s2 }
   0x4   :  { %5368 = sst [smem:[#allocation40_spill]] %s5340_s3 }
   0x5   :  { %5369 = sst [smem:[#allocation41_spill]] %s5341_s4 }
   0x6   :  { %5370 = sst [smem:[#allocation42_spill]] %s5342_s5 }
   0x7   :  { %5371 = sst [smem:[#allocation43_spill]] %s5348_s11 }
   0x8   :  { %5372 = sst [smem:[#allocation44_spill]] %s5349_s12 }
   0x9   :  { %5373 = sst [smem:[#allocation45_spill]] %s5350_s13 }
   0xa   :  { %5374 = sst [smem:[#allocation46_spill]] %s5351_s14 }
   0xb   :  { %20 = vsyncpa [#allocation5], 0 }
   0xc   :  { %22 = vsyncpa [#allocation5 + $0x1], 0 }
   0xd   :  { %23 = vsyncpa [#allocation8], 0 }
   0xe   :  { %24 = vsyncpa [#allocation11], 0 }
   0xf   :  { %25 = vsyncpa [#allocation14], 0 }
  0x10   :  { %26 = vsyncpa [#allocation17], 0 }
  0x11   :  { %27 = vsyncpa [#allocation20], 0 }
  0x12   :  { %28 = vsyncpa [#allocation6], 0 }
  0x13   :  { %30 = vsyncpa [#allocation6 + $0x1], 0 }
  0x14   :  { %31 = vsyncpa [#allocation24], 0 }
  0x15   :  { %33 = vsyncpa [#allocation24 + $0x1], 0  ;;  %s4572_s29 = smov 0   ;;  %s4574_s30 = smov 0  }
  0x16   :  { %s4576_s15 = smov 0   ;;  %s4578_s16 = smov 0  }
  0x17   :  { %s4580_s17 = smov 0   ;;  %s4582_s18 = smov 0  }
  0x18 LB: > { %5375 = sst [smem:[#allocation34_spill]] %s4464_s16  ;;  %s4603_s19 = sadd.s32 4294967295, %s4472_s18   ;;  %s4472_s18 = sphi %s4582_s18, %s39_s18   ;;  %s4468_s17 = sphi %s4580_s17, %s5420_s17   ;;  %s4464_s16 = sphi %s4578_s16, %s5419_s16   ;;  %s4460_s15 = sphi %s4576_s15, %s5418_s15   ;;  %s4456_s30 = sphi %s4574_s30, %s5417_s30   ;;  %s4452_s29 = sphi %s4572_s29, %s5416_s29  }
  0x19   : > { %5376 = sst [smem:[#allocation35_spill]] %s4603_s19  ;;  %p3274_p0 = scmp.ge.s32.totalorder %s4472_s18, 1 }
  0x1a   : > { %p5355_p1 = scmp.eq.s32.totalorder %s4603_s19, 0  ;;  %p400_p2 = scmp.lt.s32.totalorder %s4472_s18, 3 }
  0x1b   : > { %s4474_s21 = smov [#allocation7]   ;;  %s4475_s23 = smov [#allocation10]  }
  0x1c   : > { %p4608_p3 = pnand %p3274_p0, %p400_p2  ;;  %s413_s22 = sshll.u32 %s4474_s21, 4  ;;  %s414_s22 = int_to_ptr.vmem [resolvable:$true] %s413_s22 }
  0x1d   : > { %s435_s24 = sshll.u32 %s4475_s23, 4  ;;  %s4476_s26 = smov [#allocation13]   ;;  %s4621_s24 = int_to_ptr.vmem [resolvable:$true] %s435_s24 }
  0x1e   : > { %s5377_s20 = scalar_select %p4608_p3, 1, 0 }
  0x1f   : > { %p3862_p5 = pneg %p4608_p3  ;;  %s456_s27 = sshll.u32 %s4476_s26, 4  ;;  %s4623_s27 = int_to_ptr.vmem [resolvable:$true] %s456_s27 }
  0x20   : > { %5378 = sst [smem:[#allocation36_spill]] %s5377_s20  ;;  %s5380_s1 = sld [smem:[#allocation38_spill]] }
  0x21   : > { %p4617_p6 = pnand %p3862_p5, %p5355_p1 }
  0x23   : > { %p4633_p8 = pneg %p4617_p6 }
  0x26   : > { %s4000_s14 = scalar_lea.hbm %s5380_s1, 128 }
  0x27   : > { %p4001_p7 = scmp.ne.s32.totalorder %s5380_s1, %s4000_s14  ;;  %p4007_p11 = scmp.lt.u32.totalorder %s4000_s14, %s5380_s1 }
  0x29   : > { %p4003_p9 = pnand %p4633_p8, %p4001_p7 }
  0x2b   : > { %p4004_p10 = pneg %p4003_p9 }
  0x2d   : > { %p4009_p12 = pnand %p4007_p11, %p4004_p10 }
  0x2f   : > { %4012 = shalt.err (!%p4009_p12)
}
  0x30   : > { %s4013_s28 = scalar_lea.vmem %s414_s22, 128  ;;  %p4021_p5 = scmp.lt.s32.totalorder %s414_s22, %s414_s22 }
  0x31   : > { %p4014_p13 = scmp.ne.s32.totalorder %s414_s22, %s4013_s28  ;;  %p4022_p4 = scmp.lt.s32.totalorder %s4013_s28, %s4013_s28 }
  0x33   : > { %p4016_p0 = pnand %p4014_p13, %p4633_p8  ;;  %p4023_p1 = por %p4022_p4, %p4021_p5 }
  0x35   : > { %p4017_p2 = pneg %p4016_p0 }
  0x37   : > { %p4024_p3 = pnand %p4023_p1, %p4017_p2 }
  0x39   : > { %4027 = shalt.err (!%p4024_p3)
}
  0x3a   : > { %3865 = dma.hbm_to_vmem [thread:$0]  (!%p4617_p6), %s5380_s1, 128, %s414_s22, [#allocation8]  }
  0x3b   : > { %s5382_s3 = sld [smem:[#allocation40_spill]] }
  0x41   : > { %s4028_s21 = scalar_lea.hbm %s5382_s3, 16 }
  0x42   : > { %p4029_p7 = scmp.ne.s32.totalorder %s5382_s3, %s4028_s21  ;;  %p4035_p1 = scmp.lt.u32.totalorder %s4028_s21, %s5382_s3 }
  0x44   : > { %p4031_p9 = pnand %p4029_p7, %p4633_p8 }
  0x46   : > { %p4032_p4 = pneg %p4031_p9 }
  0x48   : > { %p4037_p3 = pnand %p4035_p1, %p4032_p4 }
  0x4a   : > { %4040 = shalt.err (!%p4037_p3)
}
  0x4b   : > { %s4041_s22 = scalar_lea.vmem %s4621_s24, 16  ;;  %s4048_s16 = scalar_lea.vmem %s4621_s24, 32 }
  0x4c   : > { %p4042_p10 = scmp.ne.s32.totalorder %s4621_s24, %s4041_s22  ;;  %p4049_p13 = scmp.lt.s32.totalorder %s4621_s24, %s4621_s24 }
  0x4d   : > { %p4050_p0 = scmp.lt.s32.totalorder %s4048_s16, %s4041_s22 }
  0x4e   : > { %p4044_p11 = pnand %p4042_p10, %p4633_p8 }
  0x4f   : > { %p4051_p2 = por %p4050_p0, %p4049_p13 }
  0x50   : > { %p4045_p12 = pneg %p4044_p11 }
  0x52   : > { %p4052_p5 = pnand %p4051_p2, %p4045_p12 }
  0x54   : > { %4055 = shalt.err (!%p4052_p5)
}
  0x55   : > { %3871 = dma.hbm_to_vmem [thread:$0]  (!%p4617_p6), %s5382_s3, 16, %s4621_s24, [#allocation11]  }
  0x56   : > { %s5383_s5 = sld [smem:[#allocation42_spill]] }
  0x5c   : > { %s4056_s14 = scalar_lea.hbm %s5383_s5, 1024 }
  0x5d   : > { %p4057_p7 = scmp.ne.s32.totalorder %s5383_s5, %s4056_s14  ;;  %p4063_p1 = scmp.lt.u32.totalorder %s4056_s14, %s5383_s5 }
  0x5f   : > { %p4059_p9 = pnand %p4057_p7, %p4633_p8 }
  0x61   : > { %p4060_p4 = pneg %p4059_p9 }
  0x63   : > { %p4065_p3 = pnand %p4063_p1, %p4060_p4 }
  0x65   : > { %4068 = shalt.err (!%p4065_p3)
}
  0x66   : > { %s4069_s24 = scalar_lea.vmem %s4623_s27, 1024  ;;  %p4077_p13 = scmp.lt.s32.totalorder %s4623_s27, %s4623_s27 }
  0x67   : > { %p4070_p10 = scmp.ne.s32.totalorder %s4623_s27, %s4069_s24  ;;  %p4078_p0 = scmp.lt.s32.totalorder %s4069_s24, %s4069_s24 }
  0x69   : > { %p4072_p11 = pnand %p4070_p10, %p4633_p8  ;;  %p4079_p2 = por %p4078_p0, %p4077_p13 }
  0x6b   : > { %p4073_p12 = pneg %p4072_p11 }
  0x6d   : > { %p4080_p5 = pnand %p4079_p2, %p4073_p12 }
  0x6f   : > { %4083 = shalt.err (!%p4080_p5)
}
  0x70   : > { %s4477_s16 = smov 128   ;;  %s4478_s20 = smov 8  }
  0x71   : > { %3877 = dma.hbm_to_vmem [thread:$0]  (!%p4617_p6), %s5383_s5, 1024, %s4623_s27, [#allocation14], %s4477_s16, %s4477_s16, %s4478_s20  }
  0x72   : > { %s4479_s11 = smov [#allocation16]   ;;  %s4480_s21 = smov [#allocation19]  }
  0x73   : > { %s481_s14 = sshll.u32 %s4479_s11, 4  ;;  %s502_s26 = sshll.u32 %s4480_s21, 4  ;;  %s482_s14 = int_to_ptr.vmem [resolvable:$true] %s481_s14  ;;  %s503_s26 = int_to_ptr.vmem [resolvable:$true] %s502_s26 }
  0x74   : > { %s4084_s24 = scalar_lea.hbm %s5344_s7, 16 }
  0x75   : > { %p4085_p7 = scmp.ne.s32.totalorder %s5344_s7, %s4084_s24  ;;  %p4091_p1 = scmp.lt.u32.totalorder %s4084_s24, %s5344_s7 }
  0x77   : > { %p4087_p9 = pnand %p4085_p7, %p4633_p8 }
  0x79   : > { %p4088_p4 = pneg %p4087_p9 }
  0x7b   : > { %p4093_p3 = pnand %p4091_p1, %p4088_p4 }
  0x7d   : > { %4096 = shalt.err (!%p4093_p3)
}
  0x7e   : > { %s4097_s27 = scalar_lea.vmem %s482_s14, 16  ;;  %s4104_s16 = scalar_lea.vmem %s482_s14, 32 }
  0x7f   : > { %p4098_p10 = scmp.ne.s32.totalorder %s482_s14, %s4097_s27  ;;  %p4105_p13 = scmp.lt.s32.totalorder %s482_s14, %s482_s14 }
  0x80   : > { %p4106_p0 = scmp.lt.s32.totalorder %s4104_s16, %s4097_s27 }
  0x81   : > { %p4100_p11 = pnand %p4098_p10, %p4633_p8 }
  0x82   : > { %p4107_p2 = por %p4106_p0, %p4105_p13 }
  0x83   : > { %p4101_p12 = pneg %p4100_p11 }
  0x85   : > { %p4108_p5 = pnand %p4107_p2, %p4101_p12 }
  0x87   : > { %4111 = shalt.err (!%p4108_p5)
}
  0x88   : > { %3883 = dma.hbm_to_vmem [thread:$0]  (!%p4617_p6), %s5344_s7, 16, %s482_s14, [#allocation17]  }
  0x89   : > { %s4112_s20 = scalar_lea.hbm %s5346_s9, 33792 }
  0x8a   : > { %p4113_p7 = scmp.ne.s32.totalorder %s5346_s9, %s4112_s20  ;;  %p4119_p1 = scmp.lt.u32.totalorder %s4112_s20, %s5346_s9 }
  0x8c   : > { %p4115_p9 = pnand %p4113_p7, %p4633_p8 }
  0x8e   : > { %p4116_p4 = pneg %p4115_p9 }
  0x90   : > { %p4121_p3 = pnand %p4119_p1, %p4116_p4 }
  0x92   : > { %4124 = shalt.err (!%p4121_p3)
}
  0x93   : > { %s4125_s28 = scalar_lea.vmem %s503_s26, 33792  ;;  %p4133_p13 = scmp.lt.s32.totalorder %s503_s26, %s503_s26 }
  0x94   : > { %p4126_p10 = scmp.ne.s32.totalorder %s503_s26, %s4125_s28  ;;  %p4134_p0 = scmp.lt.s32.totalorder %s4125_s28, %s4125_s28 }
  0x96   : > { %p4128_p11 = pnand %p4126_p10, %p4633_p8  ;;  %p4135_p2 = por %p4134_p0, %p4133_p13 }
  0x98   : > { %p4129_p12 = pneg %p4128_p11 }
  0x9a   : > { %p4136_p5 = pnand %p4135_p2, %p4129_p12 }
  0x9c   : > { %4139 = shalt.err (!%p4136_p5)
}
  0x9d   : > { %s4481_s14 = smov 4224   ;;  %s4482_s22 = smov 264  }
  0x9e   : > { %3889 = dma.hbm_to_vmem [thread:$0]  (!%p4617_p6), %s5346_s9, 33792, %s503_s26, [#allocation20], %s4481_s14, %s4481_s14, %s4482_s22  }
  0x9f   : > { %s4483_s16 = smov [#allocation9]   ;;  %s4484_s3 = smov [#allocation12]  }
  0xa0   : > { %s424_s1 = sshll.u32 %s4483_s16, 4  ;;  %s446_s0 = sshll.u32 %s4484_s3, 4  ;;  %s425_s1 = int_to_ptr.vmem [resolvable:$true] %s424_s1  ;;  %s447_s0 = int_to_ptr.vmem [resolvable:$true] %s446_s0 }
  0xa1   : > { %s5384_s2 = sld [smem:[#allocation39_spill]] }
  0xa7   : > { %s4140_s12 = scalar_lea.hbm %s5384_s2, 16 }
  0xa8   : > { %p4141_p7 = scmp.ne.s32.totalorder %s5384_s2, %s4140_s12  ;;  %p4147_p1 = scmp.lt.u32.totalorder %s4140_s12, %s5384_s2 }
  0xaa   : > { %p4143_p9 = pnand %p4141_p7, %p4633_p8 }
  0xac   : > { %p4144_p4 = pneg %p4143_p9 }
  0xae   : > { %p4149_p3 = pnand %p4147_p1, %p4144_p4 }
  0xb0   : > { %4152 = shalt.err (!%p4149_p3)
}
  0xb1   : > { %s4153_s26 = scalar_lea.vmem %s425_s1, 16  ;;  %s4160_s14 = scalar_lea.vmem %s425_s1, 32 }
  0xb2   : > { %p4154_p10 = scmp.ne.s32.totalorder %s425_s1, %s4153_s26  ;;  %p4161_p13 = scmp.lt.s32.totalorder %s425_s1, %s425_s1 }
  0xb3   : > { %p4162_p0 = scmp.lt.s32.totalorder %s4160_s14, %s4153_s26 }
  0xb4   : > { %p4156_p11 = pnand %p4154_p10, %p4633_p8 }
  0xb5   : > { %p4163_p2 = por %p4162_p0, %p4161_p13 }
  0xb6   : > { %p4157_p12 = pneg %p4156_p11 }
  0xb8   : > { %p4164_p5 = pnand %p4163_p2, %p4157_p12 }
  0xba   : > { %4167 = shalt.err (!%p4164_p5)
}
  0xbb   : > { %3868 = dma.hbm_to_vmem [thread:$0]  (!%p4617_p6), %s5384_s2, 16, %s425_s1, [#allocation8]  }
  0xbc   : > { %s5385_s4 = sld [smem:[#allocation41_spill]] }
  0xc2   : > { %s4168_s3 = scalar_lea.hbm %s5385_s4, 16 }
  0xc3   : > { %p4169_p7 = scmp.ne.s32.totalorder %s5385_s4, %s4168_s3  ;;  %p4175_p1 = scmp.lt.u32.totalorder %s4168_s3, %s5385_s4 }
  0xc5   : > { %p4171_p9 = pnand %p4169_p7, %p4633_p8 }
  0xc7   : > { %p4172_p4 = pneg %p4171_p9 }
  0xc9   : > { %p4177_p3 = pnand %p4175_p1, %p4172_p4 }
  0xcb   : > { %4180 = shalt.err (!%p4177_p3)
}
  0xcc   : > { %s4181_s11 = scalar_lea.vmem %s447_s0, 16  ;;  %s4188_s1 = scalar_lea.vmem %s447_s0, 32 }
  0xcd   : > { %p4182_p10 = scmp.ne.s32.totalorder %s447_s0, %s4181_s11  ;;  %p4189_p13 = scmp.lt.s32.totalorder %s447_s0, %s447_s0 }
  0xce   : > { %p4190_p0 = scmp.lt.s32.totalorder %s4188_s1, %s4181_s11 }
  0xcf   : > { %p4184_p11 = pnand %p4182_p10, %p4633_p8 }
  0xd0   : > { %p4191_p2 = por %p4190_p0, %p4189_p13 }
  0xd1   : > { %p4185_p12 = pneg %p4184_p11 }
  0xd3   : > { %p4192_p5 = pnand %p4191_p2, %p4185_p12 }
  0xd5   : > { %4195 = shalt.err (!%p4192_p5)
}
  0xd6   : > { %3874 = dma.hbm_to_vmem [thread:$0]  (!%p4617_p6), %s5385_s4, 16, %s447_s0, [#allocation11]  }
  0xd7   : > { %s4485_s26 = smov [#allocation15]   ;;  %s4486_s22 = smov [#allocation18]  }
  0xd8   : > { %s470_s14 = sshll.u32 %s4485_s26, 4  ;;  %s492_s24 = sshll.u32 %s4486_s22, 4  ;;  %s471_s14 = int_to_ptr.vmem [resolvable:$true] %s470_s14  ;;  %s493_s24 = int_to_ptr.vmem [resolvable:$true] %s492_s24 }
  0xd9   : > { %s4196_s3 = scalar_lea.hbm %s5343_s6, 16 }
  0xda   : > { %p4197_p7 = scmp.ne.s32.totalorder %s5343_s6, %s4196_s3  ;;  %p4203_p1 = scmp.lt.u32.totalorder %s4196_s3, %s5343_s6 }
  0xdc   : > { %p4199_p9 = pnand %p4197_p7, %p4633_p8 }
  0xde   : > { %p4200_p4 = pneg %p4199_p9 }
  0xe0   : > { %p4205_p3 = pnand %p4203_p1, %p4200_p4 }
  0xe2   : > { %4208 = shalt.err (!%p4205_p3)
}
  0xe3   : > { %s4209_s0 = scalar_lea.vmem %s471_s14, 16  ;;  %s4216_s11 = scalar_lea.vmem %s471_s14, 32 }
  0xe4   : > { %p4210_p10 = scmp.ne.s32.totalorder %s471_s14, %s4209_s0  ;;  %p4217_p13 = scmp.lt.s32.totalorder %s471_s14, %s471_s14 }
  0xe5   : > { %p4218_p0 = scmp.lt.s32.totalorder %s4216_s11, %s4209_s0 }
  0xe6   : > { %p4212_p11 = pnand %p4210_p10, %p4633_p8 }
  0xe7   : > { %p4219_p2 = por %p4218_p0, %p4217_p13 }
  0xe8   : > { %p4213_p12 = pneg %p4212_p11 }
  0xea   : > { %p4220_p5 = pnand %p4219_p2, %p4213_p12 }
  0xec   : > { %4223 = shalt.err (!%p4220_p5)
}
  0xed   : > { %3880 = dma.hbm_to_vmem [thread:$0]  (!%p4617_p6), %s5343_s6, 16, %s471_s14, [#allocation14]  }
  0xee   : > { %s4224_s22 = scalar_lea.hbm %s5345_s8, 16 }
  0xef   : > { %p4225_p7 = scmp.ne.s32.totalorder %s5345_s8, %s4224_s22  ;;  %p4231_p1 = scmp.lt.u32.totalorder %s4224_s22, %s5345_s8 }
  0xf1   : > { %p4227_p9 = pnand %p4225_p7, %p4633_p8 }
  0xf3   : > { %p4228_p4 = pneg %p4227_p9 }
  0xf5   : > { %p4233_p3 = pnand %p4231_p1, %p4228_p4 }
  0xf7   : > { %4236 = shalt.err (!%p4233_p3)
}
  0xf8   : > { %s4237_s20 = scalar_lea.vmem %s493_s24, 16  ;;  %s4244_s14 = scalar_lea.vmem %s493_s24, 32 }
  0xf9   : > { %p4238_p10 = scmp.ne.s32.totalorder %s493_s24, %s4237_s20  ;;  %p4245_p13 = scmp.lt.s32.totalorder %s493_s24, %s493_s24 }
  0xfa   : > { %p4246_p0 = scmp.lt.s32.totalorder %s4244_s14, %s4237_s20 }
  0xfb   : > { %p4240_p11 = pnand %p4238_p10, %p4633_p8 }
  0xfc   : > { %p4247_p2 = por %p4246_p0, %p4245_p13 }
  0xfd   : > { %p4241_p12 = pneg %p4240_p11 }
  0xff   : > { %p4248_p5 = pnand %p4247_p2, %p4241_p12 }
 0x101   : > { %4251 = shalt.err (!%p4248_p5)
}
 0x102   : > { %3886 = dma.hbm_to_vmem [thread:$0]  (!%p4617_p6), %s5345_s8, 16, %s493_s24, [#allocation17]  }
 0x103   : > { %s4487_s0 = smov [#allocation21]   ;;  %s4252_s28 = scalar_lea.hbm %s5347_s10, 528 }
 0x104   : > { %s516_s11 = sshll.u32 %s4487_s0, 4  ;;  %p4253_p7 = scmp.ne.s32.totalorder %s5347_s10, %s4252_s28  ;;  %s517_s11 = int_to_ptr.vmem [resolvable:$true] %s516_s11 }
 0x105   : > { %p4259_p1 = scmp.lt.u32.totalorder %s4252_s28, %s5347_s10 }
 0x106   : > { %p4255_p9 = pnand %p4253_p7, %p4633_p8 }
 0x108   : > { %p4256_p4 = pneg %p4255_p9 }
 0x10a   : > { %p4261_p3 = pnand %p4259_p1, %p4256_p4 }
 0x10c   : > { %4264 = shalt.err (!%p4261_p3)
}
 0x10d   : > { %s4265_s24 = scalar_lea.vmem %s517_s11, 528  ;;  %s4272_s3 = scalar_lea.vmem %s517_s11, 544 }
 0x10e   : > { %p4266_p10 = scmp.ne.s32.totalorder %s517_s11, %s4265_s24  ;;  %p4273_p13 = scmp.lt.s32.totalorder %s517_s11, %s517_s11 }
 0x10f   : > { %p4274_p0 = scmp.lt.s32.totalorder %s4272_s3, %s4265_s24 }
 0x110   : > { %p4268_p11 = pnand %p4266_p10, %p4633_p8 }
 0x111   : > { %p4275_p2 = por %p4274_p0, %p4273_p13 }
 0x112   : > { %p4269_p12 = pneg %p4268_p11 }
 0x114   : > { %p4276_p5 = pnand %p4275_p2, %p4269_p12 }
 0x116   : > { %4279 = shalt.err (!%p4276_p5)
}
 0x117   : > { %s5386_s23 = sld [smem:[#allocation35_spill]]  ;;  %s5364_s14 = sadd.s32 4294967294, %s4472_s18  }
 0x118   : > { %3892 = dma.hbm_to_vmem [thread:$0]  (!%p4617_p6), %s5347_s10, 528, %s517_s11, [#allocation20]  }
 0x119   : > { %s51_s12 = sadd.s32 1, %s4468_s17  ;;  %s58_s25 = sadd.s32 1, %s4460_s15 }
 0x11a   : > { %p53_p8 = scmp.ge.s32.totalorder %s51_s12, 2  ;;  %p65_p7 = scmp.ne.s32.totalorder %s4460_s15, %s4456_s30 }
 0x11b   : > { %p66_p9 = scmp.eq.s32.totalorder %s4472_s18, 0  ;;  %p71_p1 = scmp.ne.s32.totalorder %s4456_s30, %s4452_s29 }
 0x11c   : > { %s5422_s12 = smov (%p53_p8, %s51_s12), 0  ;;  %p339_p13 = scmp.eq.s32.totalorder %s5364_s14, 1 }
 0x11d   : > { %p4830_p4 = por %p66_p9, %p65_p7  ;;  %s55_s0 = ssub.s32 %s4468_s17, %s5422_s12 }
 0x11e   : > { %p333_p6 = scmp.eq.s32.totalorder %s5386_s23, 1  ;;  %p56_p3 = scmp.eq.s32.totalorder %s55_s0, 0 }
 0x11f   : > { %p5388_p10 = scmp.eq.s32.totalorder %s5386_s23, 0  ;;  %p4854_p0 = por %p339_p13, %p71_p1 }
 0x120   : > { %p4845_p12 = por %p333_p6, %p65_p7  ;;  %p3917_p2 = scmp.lt.s32.totalorder %s4472_s18, 2 }
 0x121   : > { %p4841_p11 = por %p5388_p10, %p71_p1  ;;  %s527_s26 = sand.u32 1, %s4460_s15  }
 0x122   : > { %s5390_s1 = scalar_select %p4845_p12, 1, 0 }
 0x123   : > { %s4852_s21 = scalar_select %p56_p3, %s4460_s15, %s58_s25  }
 0x124   : > { %s5391_s28 = scalar_select %p4854_p0, 1, 0 }
 0x125   : > { %s3286_s22 = sshll.u32 %s4468_s17, 4  ;;  %s5392_s24 = sld [smem:[#allocation37_spill]] }
 0x126   : > { %s530_s19 = scalar_lea.vmem [#allocation4], %s527_s26  ;;  %p4870_p5 = pnand %p3917_p2, %p4830_p4 }
 0x127   : > { %s537_s20 = sshll.u32 %s530_s19, 4  ;;  %s528_s25 = scalar_lea.sflag [#allocation5], %s527_s26  ;;  %s4866_s20 = int_to_ptr.vmem [resolvable:$true] %s537_s20 }
 0x128   : > { %p4282_p7 = pneg %p4870_p5 }
 0x12b   : > { %s4864_s3 = scalar_lea.hbm %s5392_s24, %s3286_s22  ;;  %s4285_s16 = scalar_lea.hbm %s5392_s24, 32 }
 0x12c   : > { %s4280_s0 = scalar_lea.hbm %s4864_s3, 16  ;;  %p4286_p4 = scmp.lt.u32.totalorder %s4864_s3, %s5392_s24 }
 0x12d   : > { %p4281_p8 = scmp.ne.s32.totalorder %s4864_s3, %s4280_s0  ;;  %p4287_p6 = scmp.lt.u32.totalorder %s4285_s16, %s4280_s0 }
 0x12e   : > { %p4289_p10 = scmp.lt.u32.totalorder %s4280_s0, %s4864_s3 }
 0x12f   : > { %p4283_p9 = pnand %p4282_p7, %p4281_p8  ;;  %p4288_p3 = por %p4287_p6, %p4286_p4 }
 0x131   : > { %p4284_p1 = pneg %p4283_p9  ;;  %p4290_p13 = por %p4289_p10, %p4288_p3 }
 0x133   : > { %p4291_p2 = pnand %p4290_p13, %p4284_p1 }
 0x135   : > { %4294 = shalt.err (!%p4291_p2)
}
 0x136   : > { %s4295_s26 = scalar_lea.vmem %s4866_s20, 16  ;;  %s4488_s22 = smov [#allocation4]  }
 0x137   : > { %p4296_p8 = scmp.ne.s32.totalorder %s4866_s20, %s4295_s26  ;;  %s4300_s27 = sshll.u32 %s4488_s22, 4  ;;  %s4301_s27 = int_to_ptr.vmem [resolvable:$false] %s4300_s27 }
 0x138   : > { %s4302_s13 = scalar_lea.vmem %s4301_s27, 32  ;;  %p4303_p12 = scmp.lt.s32.totalorder %s4866_s20, %s4301_s27 }
 0x139   : > { %p4298_p9 = pnand %p4296_p8, %p4282_p7  ;;  %p4304_p4 = scmp.lt.s32.totalorder %s4302_s13, %s4295_s26 }
 0x13b   : > { %p4299_p0 = pneg %p4298_p9  ;;  %p4305_p6 = por %p4304_p4, %p4303_p12 }
 0x13d   : > { %p4306_p3 = pnand %p4305_p6, %p4299_p0 }
 0x13f   : > { %4309 = shalt.err (!%p4306_p3)
}
 0x140   : > { %3896 = dma.hbm_to_vmem [thread:$0]  (!%p4870_p5), %s4864_s3, 16, %s4866_s20, %s528_s25  }
 0x141   : > { %s5394_s0 = sld [smem:[#allocation36_spill]] }
 0x147   : > { %p5395_p1 = scmp.ne.s32.totalorder %s5394_s0, 0 }
 0x148   : > { %s4902_s16 = sand.u32 (!%p5395_p1), 1, %s4456_s30  }
 0x149   : > { %559 = sbr.rel (%p5395_p1) target bundleno = 2022 (0x7e6), region = 68  ;;  %s562_s19 = scalar_lea.sflag (!%p5395_p1), [#allocation5], %s4902_s16 }
 0x14a   : > { %s564_s22 = scalar_lea.vmem (!%p5395_p1), [#allocation4], %s4902_s16 }
 0x150   : > { %4419 = dma.done.wait (%p4841_p11), %s562_s19, 16  }
 0x151   : > { %4421 = vsyncadd (%p4841_p11), %s562_s19, 4294967280  ;;  %s5396_s23 = sld [smem:[#allocation35_spill]] }
 0x157   : > { %p5397_p12 = scmp.eq.s32.totalorder %s5396_s23, 0 }
 0x159   : > { %4423 = dma.done.wait (%p5397_p12), [#allocation8], 144   ;;  %p5398_p0 = pmov %p5397_p12 }
 0x15b   : > { %4425 = vsyncadd (%p5398_p0), [#allocation8], 4294967152  ;;  %p5399_p5 = pmov %p5398_p0 }
 0x15c   : > { %p5400_p7 = pmov %p5398_p0 }
 0x15d   : > { %4427 = dma.done.wait (%p5399_p5), [#allocation11], 32  }
 0x15e   : > { %4429 = vsyncadd (%p5400_p7), [#allocation11], 4294967264  ;;  %p5401_p10 = pmov %p5398_p0 }
 0x15f   : > { %p5402_p13 = pmov %p5398_p0 }
 0x160   : > { %4431 = dma.done.wait (%p5401_p10), [#allocation14], 1040  }
 0x161   : > { %4433 = vsyncadd (%p5402_p13), [#allocation14], 4294966256  ;;  %p5403_p11 = pmov %p5398_p0 }
 0x162   : > { %p5404_p2 = pmov %p5398_p0 }
 0x163   : > { %4435 = dma.done.wait (%p5403_p11), [#allocation17], 32  }
 0x164   : > { %4437 = vsyncadd (%p5404_p2), [#allocation17], 4294967264  ;;  %p5405_p8 = pmov %p5398_p0 }
 0x165   : > { %p5406_p9 = pmov %p5398_p0 }
 0x166   : > { %4439 = dma.done.wait (%p5405_p8), [#allocation20], 34320  }
 0x167   : > { %4441 = vsyncadd (%p5406_p9), [#allocation20], 4294932976  ;;  %v4489_v0 = vmov 0.0   ;;  %vm4490_vm0 = vmmov 0   ;;  %vm684_vm1 = vcmask 64512   ;;  %v682_v1 = vld [vmem:[#allocation7] sm:$0xff] }
 0x168   : > { %3423 = vmatprep.subr.mxu0 %v4489_v0  ;;  %3425 = vmatprep.mubr.msk.f32.mxu0 %vm4490_vm0, %v4489_v0  ;;  %v681_v2 = vld [vmem:[%s564_s22] sm:$0x1]  ;;  %v683_v3 = vld [vmem:[#allocation9] sm:$0x1]  ;;  %vm758_vm2 = vcmask 516096   ;;  %v778_v13 = vld [vmem:[#allocation13] sm:$0xff] }
 0x169   : > { %3444 = vmatprep.mubr.msk.f32.mxu1 %vm4490_vm0, %v4489_v0  ;;  %3424 = vmatpush3.msra.mxu0 %v682_v1  ;;  %v779_v14 = vld [vmem:[#allocation13 + $0x8] sm:$0xff]  ;;  %v4491_v16 = vmov 0.0|0.0   ;;  %v780_v17 = vld [vmem:[#allocation13 + $0x10] sm:$0xff]  ;;  %v781_v18 = vld [vmem:[#allocation13 + $0x18] sm:$0xff]  ;;  %vm787_vm3 = vcmask 523264   ;;  %s5407_s11 = sld [smem:[#allocation34_spill]] }
 0x16a   : > { %3426 = vmatmul.mubr.msk.f32.vlgmr.msra.gmra.mrb[0].mxu0 %vm684_vm1, %v681_v2  ;;  %v3523_v15 = vpack.c.bf16 %v779_v14, %v778_v13  ;;  %3522 = vmatprep.subr.bf16.mxu1 %v4491_v16  ;;  %v3526_v19 = vpack.c.bf16 %v781_v18, %v780_v17  ;;  %v782_v20 = vld [vmem:[#allocation13 + $0x20] sm:$0xff]  ;;  %v783_v21 = vld [vmem:[#allocation13 + $0x28] sm:$0xff]  ;;  %v784_v23 = vld [vmem:[#allocation13 + $0x30] sm:$0xff]  ;;  %s5408_s27 = sld [smem:[#allocation43_spill]]  ;;  %vm2613_vm4 = vcmask 261120   ;;  %s3298_s0 = sshll.u32 %s4902_s16, 5 }
 0x16b   : > { %1385 = vmatprep.mubr.f32.mxu0 %v4489_v0  ;;  %v3529_v22 = vpack.c.bf16 %v783_v21, %v782_v20  ;;  %v785_v24 = vld [vmem:[#allocation13 + $0x38] sm:$0xff]  ;;  %v786_v36 = vld [vmem:[#allocation15] sm:$0x1]  ;;  %v880_v46 = vld [vmem:[#allocation19 + $0x8] sm:$0xff]  ;;  %s5043_s19 = scalar_lea.vmem [#allocation22], %s3298_s0  ;;  %s658_s22 = scalar_lea.vmem [#allocation23], %s4902_s16 }
 0x16c   : > { %3524 = vmatpush3.bf16.msra.mxu1 %v3523_v15  ;;  %v3532_v25 = vpack.c.bf16 %v785_v24, %v784_v23  ;;  %v773_v30 = vld [vmem:[#allocation10] sm:$0x1]  ;;  %v775_v32 = vld [vmem:[#allocation12] sm:$0x1]  ;;  %v915_v50 = vld [vmem:[#allocation19 + $0x120] sm:$0xff]  ;;  %s3006_s14 = sshll.u32 %s658_s22, 4  ;;  %s5145_s14 = int_to_ptr.vmem [resolvable:$true] %s3006_s14 }
 0x16d   : > { %3525 = vmatprep.subr.bf16.mxu1 %v4491_v16  ;;  %v913_v47 = vld [vmem:[#allocation19 + $0x110] sm:$0xff]  ;;  %v882_v48 = vld [vmem:[#allocation19 + $0x18] sm:$0xff]  ;;  %v879_v51 = vld [vmem:[#allocation19] sm:$0xff]  ;;  %p5410_p3 = scmp.ne.s32.totalorder %s5390_s1, 0 }
 0x16e   : > { %v3534_v49 = vpack.c.bf16 %v913_v47, %v880_v46  ;;  %v912_v52 = vld [vmem:[#allocation19 + $0x108] sm:$0xff]  ;;  %v3550_v53 = vpack.c.bf16 %v915_v50, %v882_v48  ;;  %v881_v55 = vld [vmem:[#allocation19 + $0x10] sm:$0xff]  ;;  %v914_v56 = vld [vmem:[#allocation19 + $0x118] sm:$0xff] }
 0x16f   : > { %v3536_v54 = vpack.c.bf16 %v912_v52, %v879_v51  ;;  %v3552_v57 = vpack.c.bf16 %v914_v56, %v881_v55  ;;  %v946_v58 = vld [vmem:[#allocation19 + $0x218] sm:$0xff]  ;;  %v979_v59 = vld [vmem:[#allocation19 + $0x320] sm:$0xff]  ;;  %v948_v60 = vld [vmem:[#allocation19 + $0x228] sm:$0xff]  ;;  %p667_p4 = scmp.lt.s32.totalorder %s5407_s11, 1  ;;  %s3365_s2 = sshll.u32 %s5407_s11, 9 }
 0x170   : > { %3527 = vmatpush3.bf16.msra.mxu1 %v3526_v19  ;;  %3535 = vmatprep.subr.bf16.mxu0 %v3534_v49  ;;  %v3538_v61 = vpack.c.bf16 %v979_v59, %v946_v58  ;;  %v981_v62 = vld [vmem:[#allocation19 + $0x330] sm:$0xff]  ;;  %v978_v1 = vld [vmem:[#allocation19 + $0x318] sm:$0xff]  ;;  %v1044_v13 = vld [vmem:[#allocation19 + $0x528] sm:$0xff] }
 0x171   : > { %3528 = vmatprep.subr.bf16.mxu1 %v4491_v16  ;;  %3537 = vmatpush1.bf16.msra.mxu0 %v3536_v54  ;;  %v945_v63 = vld [vmem:[#allocation19 + $0x210] sm:$0xff]  ;;  %v3554_v2 = vpack.c.bf16 %v981_v62, %v948_v60  ;;  %v1046_v18 = vld [vmem:[#allocation19 + $0x538] sm:$0xff]  ;;  %v1111_v21 = vld [vmem:[#allocation19 + $0x740] sm:$0xff]  ;;  %s668_s3 = scalar_select %p667_p4, %s5407_s11, 1 }
 0x172   : > { %3539 = vmatprep.subr.bf16.mxu0 %v3538_v61  ;;  %v1013_v17 = vld [vmem:[#allocation19 + $0x430] sm:$0xff]  ;;  %v1078_v20 = vld [vmem:[#allocation19 + $0x638] sm:$0xff]  ;;  %v883_v46 = vld [vmem:[#allocation19 + $0x20] sm:$0xff] }
 0x173   : > { %v3560_v19 = vpack.c.bf16 %v1046_v18, %v1013_v17  ;;  %v3546_v23 = vpack.c.bf16 %v1111_v21, %v1078_v20  ;;  %v1113_v24 = vld [vmem:[#allocation19 + $0x750] sm:$0xff]  ;;  %v916_v47 = vld [vmem:[#allocation19 + $0x128] sm:$0xff]  ;;  %v918_v50 = vld [vmem:[#allocation19 + $0x138] sm:$0xff]  ;;  %s3364_s20 = sshll.u32 %s668_s3, 8  ;;  %s2972_s3 = sand.u32 1, %s5396_s23  }
 0x174   : > { %3530 = vmatpush3.bf16.msra.mxu1 %v3529_v22  ;;  %v1080_v22 = vld [vmem:[#allocation19 + $0x648] sm:$0xff]  ;;  %v885_v49 = vld [vmem:[#allocation19 + $0x30] sm:$0xff]  ;;  %v950_v51 = vld [vmem:[#allocation19 + $0x238] sm:$0xff]  ;;  %v3568_v56 = vpack.c.bf16 %v916_v47, %v883_v46  ;;  %s5024_s13 = scalar_lea.vmem %s5408_s27, %s3364_s20  ;;  %s3359_s20 = sshll.u32 %s5407_s11, 4 }
 0x175   : > { %3531 = vmatprep.subr.bf16.mxu1 %v4491_v16  ;;  %v983_v52 = vld [vmem:[#allocation19 + $0x340] sm:$0xff]  ;;  %v985_v54 = vld [vmem:[#allocation19 + $0x350] sm:$0xff]  ;;  %v982_v59 = vld [vmem:[#allocation19 + $0x338] sm:$0xff]  ;;  %s5409_s27 = sld [smem:[#allocation45_spill]]  ;;  %s5148_s4 = scalar_lea.sflag [#allocation24], %s2972_s3 }
 0x176   : > { %v949_v58 = vld [vmem:[#allocation19 + $0x230] sm:$0xff]  ;;  %v3570_v61 = vpack.c.bf16 %v983_v52, %v950_v51  ;;  %v1114_v21 = vld [vmem:[#allocation19 + $0x758] sm:$0xff]  ;;  %v1020_v51 = vld [vmem:[#allocation19 + $0x468] sm:$0xff]  ;;  %s4492_s23 = smov [#allocation23]  }
 0x177   : > { %v1117_v17 = vld [vmem:[#allocation19 + $0x770] sm:$0xff]  ;;  %v986_v46 = vld [vmem:[#allocation19 + $0x358] sm:$0xff]  ;;  %s4314_s5 = sshll.u32 %s4492_s23, 4  ;;  %s4315_s5 = int_to_ptr.vmem [resolvable:$false] %s4314_s5 }
 0x178   : > { %3533 = vmatpush3.bf16.msra.mxu1 %v3532_v25  ;;  %v1077_v25 = vld [vmem:[#allocation19 + $0x630] sm:$0xff]  ;;  %p4317_p0 = scmp.lt.s32.totalorder %s5145_s14, %s4315_s5 }
 0x179   : > { %3551 = vmatprep.subr.bf16.mxu1 %v3550_v53  ;;  %v952_v53 = vld [vmem:[#allocation19 + $0x248] sm:$0xff]  ;;  %v1081_v20 = vld [vmem:[#allocation19 + $0x650] sm:$0xff] }
 0x17a   : > { %v3586_v62 = vpack.c.bf16 %v985_v54, %v952_v53  ;;  %v1053_v52 = vld [vmem:[#allocation19 + $0x570] sm:$0xff]  ;;  %v1022_v53 = vld [vmem:[#allocation19 + $0x478] sm:$0xff]  ;;  %v1055_v54 = vld [vmem:[#allocation19 + $0x580] sm:$0xff] }
 0x17b   : > { %s5141_s0 = scalar_lea.hbm %s5409_s27, %s3359_s20  ;;  %s4316_s20 = scalar_lea.vmem %s4315_s5, 32 }
 0x23d   : > { %v754_v4 = vpop.f32.mrb[0].mxu0 }
 0x23e   : > { %v755_v5 = vadd.f32 %v754_v4, %v683_v3  ;;  %v3427_v6 = vpop.f32.mrb[1].mxu0  ;;  %v3540_v3 = vpack.c.bf16 %v978_v1, %v945_v63  ;;  %v947_v4 = vld [vmem:[#allocation19 + $0x220] sm:$0xff]  ;;  %v984_v63 = vld [vmem:[#allocation19 + $0x348] sm:$0xff] }
 0x23f   : > { %v1016_v1 = vld [vmem:[#allocation19 + $0x448] sm:$0xff] }
 0x240   : > { %v759_v7 = vsel %vm758_vm2, %v755_v5, 0.0  ;;  %3541 = vmatpush1.bf16.msra.mxu0 %v3540_v3  ;;  %v1018_v3 = vld [vmem:[#allocation19 + $0x458] sm:$0xff] }
 0x241   : > { %760 = vadd.xlane.f32.xlu0 %v759_v7  ;;  %v1012_v7 = vld [vmem:[#allocation19 + $0x428] sm:$0xff] }
 0x2ce   : > { %v761_v8 = vpop.xlane.xlu0 %760 }
 0x2cf   : > { %v763_v9 = vmul.f32 0.015625, %v761_v8  ;;  %v1045_v8 = vld [vmem:[#allocation19 + $0x530] sm:$0xff] }
 0x2d1   : > { %v764_v10 = vsub.f32 %v755_v5, %v763_v9  ;;  %v980_v5 = vld [vmem:[#allocation19 + $0x328] sm:$0xff]  ;;  %v1014_v9 = vld [vmem:[#allocation19 + $0x438] sm:$0xff] }
 0x2d2   : > { %v3556_v6 = vpack.c.bf16 %v980_v5, %v947_v4  ;;  %v1051_v4 = vld [vmem:[#allocation19 + $0x560] sm:$0xff]  ;;  %v3572_v5 = vpack.c.bf16 %v982_v59, %v949_v58  ;;  %v1052_v58 = vld [vmem:[#allocation19 + $0x568] sm:$0xff]  ;;  %v3606_v59 = vpack.c.bf16 %v1053_v52, %v1020_v51 }
 0x2d3   : > { %v765_v11 = vmul.f32 %v764_v10, %v764_v10  ;;  %v1123_v51 = vld [vmem:[#allocation19 + $0x7a0] sm:$0xff]  ;;  %v1092_v52 = vld [vmem:[#allocation19 + $0x6a8] sm:$0xff] }
 0x2d5   : > { %v766_v12 = vsel %vm758_vm2, %v765_v11, 0.0  ;;  %v1047_v11 = vld [vmem:[#allocation19 + $0x540] sm:$0xff] }
 0x2d6   : > { %767 = vadd.xlane.f32.xlu0 %v766_v12  ;;  %v1011_v12 = vld [vmem:[#allocation19 + $0x420] sm:$0xff]  ;;  %v3558_v14 = vpack.c.bf16 %v1047_v11, %v1014_v9  ;;  %v1017_v11 = vld [vmem:[#allocation19 + $0x450] sm:$0xff] }
 0x2d7   : > { %v3544_v15 = vpack.c.bf16 %v1044_v13, %v1011_v12  ;;  %v1050_v12 = vld [vmem:[#allocation19 + $0x558] sm:$0xff] }
 0x2d8   : > { %v1082_v13 = vld [vmem:[#allocation19 + $0x658] sm:$0xff] }
 0x363   : > { %v768_v26 = vpop.xlane.xlu0 %767 }
 0x364   : > { %v769_v27 = vmul.f32 0.015625, %v768_v26  ;;  %v1110_v26 = vld [vmem:[#allocation19 + $0x738] sm:$0xff] }
 0x366   : > { %v770_v28 = vadd.f32 1e-05, %v769_v27  ;;  %v3562_v27 = vpack.c.bf16 %v1113_v24, %v1080_v22  ;;  %v1083_v24 = vld [vmem:[#allocation19 + $0x660] sm:$0xff] }
 0x368   : > { %3996 = vrsqrt.f32 %v770_v28  ;;  %v3548_v28 = vpack.c.bf16 %v1110_v26, %v1077_v25  ;;  %v1116_v25 = vld [vmem:[#allocation19 + $0x768] sm:$0xff] }
 0x369   : > { %v888_v26 = vld [vmem:[#allocation19 + $0x48] sm:$0xff] }
 0x372   : > { %v3997_v29 = vpop.eup %3996 }
 0x373   : > { %v772_v31 = vmul.f32 %v3997_v29, %v764_v10  ;;  %v3542_v10 = vpack.c.bf16 %v1045_v8, %v1012_v7  ;;  %v1079_v29 = vld [vmem:[#allocation19 + $0x640] sm:$0xff]  ;;  %v1048_v8 = vld [vmem:[#allocation19 + $0x548] sm:$0xff] }
 0x374   : > { %v1015_v7 = vld [vmem:[#allocation19 + $0x440] sm:$0xff] }
 0x375   : > { %v774_v33 = vmul.f32 %v773_v30, %v772_v31  ;;  %3543 = vmatprep.subr.bf16.mxu0 %v3542_v10  ;;  %v1112_v30 = vld [vmem:[#allocation19 + $0x748] sm:$0xff]  ;;  %v3590_v10 = vpack.c.bf16 %v1051_v4, %v1018_v3  ;;  %v3576_v18 = vpack.c.bf16 %v1048_v8, %v1015_v7  ;;  %v1121_v3 = vld [vmem:[#allocation19 + $0x790] sm:$0xff]  ;;  %v1118_v7 = vld [vmem:[#allocation19 + $0x778] sm:$0xff] }
 0x376   : > { %3545 = vmatpush1.bf16.msra.mxu0 %v3544_v15  ;;  %v3564_v31 = vpack.c.bf16 %v1112_v30, %v1079_v29  ;;  %v1084_v15 = vld [vmem:[#allocation19 + $0x668] sm:$0xff]  ;;  %v923_v29 = vld [vmem:[#allocation19 + $0x160] sm:$0xff]  ;;  %v3580_v30 = vpack.c.bf16 %v1114_v21, %v1081_v20 }
 0x377   : > { %v776_v34 = vadd.f32 %v775_v32, %v774_v33  ;;  %3547 = vmatprep.subr.bf16.mxu0 %v3546_v23  ;;  %v884_v32 = vld [vmem:[#allocation19 + $0x28] sm:$0xff]  ;;  %v917_v33 = vld [vmem:[#allocation19 + $0x130] sm:$0xff]  ;;  %v3594_v23 = vpack.c.bf16 %v1117_v17, %v1084_v15  ;;  %v927_v15 = vld [vmem:[#allocation19 + $0x180] sm:$0xff] }
 0x378   : > { %v924_v20 = vld [vmem:[#allocation19 + $0x168] sm:$0xff] }
 0x379   : > { %v777_v35 = vmax.f32 %v776_v34, 0.0  ;;  %v886_v34 = vld [vmem:[#allocation19 + $0x38] sm:$0xff] }
 0x37a   : > { %3549 = vmatpush1.bf16.msra.mxu0 %v3548_v28  ;;  %v890_v28 = vld [vmem:[#allocation19 + $0x58] sm:$0xff] }
 0x37b   : > { %3445 = vmatmul.mubr.msk.f32.vlgmr.msra.gmra.mrb[0].mxu1 %vm787_vm3, %v777_v35  ;;  %v3566_v35 = vpack.c.bf16 %v917_v33, %v884_v32  ;;  %v887_v32 = vld [vmem:[#allocation19 + $0x40] sm:$0xff]  ;;  %v920_v33 = vld [vmem:[#allocation19 + $0x148] sm:$0xff] }
 0x37c   : > { %1456 = vmatprep.mubr.f32.mxu1 %v4489_v0  ;;  %3553 = vmatpush1.bf16.msra.mxu1 %v3552_v57  ;;  %v3584_v57 = vpack.c.bf16 %v918_v50, %v885_v49  ;;  %v955_v49 = vld [vmem:[#allocation19 + $0x260] sm:$0xff]  ;;  %v988_v50 = vld [vmem:[#allocation19 + $0x368] sm:$0xff] }
 0x37d   : > { %3555 = vmatprep.subr.bf16.mxu1 %v3554_v2  ;;  %3567 = vmatprep.subr.bf16.mxu0 %v3566_v35  ;;  %v1049_v2 = vld [vmem:[#allocation19 + $0x550] sm:$0xff]  ;;  %v3614_v35 = vpack.c.bf16 %v923_v29, %v890_v28 }
 0x37e   : > { %v3574_v9 = vpack.c.bf16 %v1049_v2, %v1016_v1  ;;  %v1119_v1 = vld [vmem:[#allocation19 + $0x780] sm:$0xff]  ;;  %v1088_v2 = vld [vmem:[#allocation19 + $0x688] sm:$0xff]  ;;  %v993_v28 = vld [vmem:[#allocation19 + $0x390] sm:$0xff] }
 0x380   : > { %3557 = vmatpush1.bf16.msra.mxu1 %v3556_v6 }
 0x381   : > { %3559 = vmatprep.subr.bf16.mxu1 %v3558_v14  ;;  %v1115_v14 = vld [vmem:[#allocation19 + $0x760] sm:$0xff] }
 0x382   : > { %v3578_v22 = vpack.c.bf16 %v1115_v14, %v1082_v13  ;;  %v925_v13 = vld [vmem:[#allocation19 + $0x170] sm:$0xff]  ;;  %v894_v14 = vld [vmem:[#allocation19 + $0x78] sm:$0xff] }
 0x384   : > { %3561 = vmatpush1.bf16.msra.mxu1 %v3560_v19  ;;  %v3592_v19 = vpack.c.bf16 %v1050_v12, %v1017_v11  ;;  %v1120_v11 = vld [vmem:[#allocation19 + $0x788] sm:$0xff] }
 0x385   : > { %3563 = vmatprep.subr.bf16.mxu1 %v3562_v27  ;;  %v921_v27 = vld [vmem:[#allocation19 + $0x150] sm:$0xff]  ;;  %v892_v12 = vld [vmem:[#allocation19 + $0x68] sm:$0xff] }
 0x386   : > { %v3630_v21 = vpack.c.bf16 %v925_v13, %v892_v12  ;;  %v995_v12 = vld [vmem:[#allocation19 + $0x3a0] sm:$0xff]  ;;  %v964_v13 = vld [vmem:[#allocation19 + $0x2a8] sm:$0xff] }
 0x388   : > { %3565 = vmatpush1.bf16.msra.mxu1 %v3564_v31  ;;  %v3596_v31 = vpack.c.bf16 %v1116_v25, %v1083_v24  ;;  %v926_v24 = vld [vmem:[#allocation19 + $0x178] sm:$0xff] }
 0x389   : > { %v958_v25 = vld [vmem:[#allocation19 + $0x278] sm:$0xff] }
 0x44e   : > { %v857_v37 = vpop.f32.mrb[0].mxu1 }
 0x44f   : > { %v858_v38 = vadd.f32 %v857_v37, %v786_v36  ;;  %v3446_v39 = vpop.f32.mrb[1].mxu1  ;;  %v919_v36 = vld [vmem:[#allocation19 + $0x140] sm:$0xff] }
 0x450   : > { %v3582_v37 = vpack.c.bf16 %v919_v36, %v886_v34  ;;  %v3598_v34 = vpack.c.bf16 %v921_v27, %v888_v26  ;;  %v889_v36 = vld [vmem:[#allocation19 + $0x50] sm:$0xff]  ;;  %v991_v26 = vld [vmem:[#allocation19 + $0x380] sm:$0xff]  ;;  %v960_v27 = vld [vmem:[#allocation19 + $0x288] sm:$0xff] }
 0x451   : > { %v861_v40 = vsel %vm758_vm2, %v858_v38, 0.0 }
 0x452   : > { %862 = vadd.xlane.f32.xlu1 %v861_v40  ;;  %3583 = vmatprep.subr.bf16.mxu1 %v3582_v37  ;;  %v922_v37 = vld [vmem:[#allocation19 + $0x158] sm:$0xff] }
 0x4df   : > { %v863_v41 = vpop.xlane.xlu1 %862 }
 0x4e0   : > { %v864_v42 = vmul.f32 0.015625, %v863_v41 }
 0x4e2   : > { %v4945_v43 = vsub.f32 %v858_v38, %v864_v42  ;;  %v874_v42 = vld [vmem:[#allocation16] sm:$0x1] }
 0x4e4   : > { %v866_v44 = vmul.f32 %v4945_v43, %v4945_v43 }
 0x4e6   : > { %v867_v45 = vsel %vm758_vm2, %v866_v44, 0.0 }
 0x4e7   : > { %868 = vadd.xlane.f32.xlu1 %v867_v45  ;;  %v876_v45 = vld [vmem:[#allocation18] sm:$0x1] }
 0x574   : > { %v869_v38 = vpop.xlane.xlu1 %868 }
 0x575   : > { %v870_v39 = vmul.f32 0.015625, %v869_v38  ;;  %v954_v38 = vld [vmem:[#allocation19 + $0x258] sm:$0xff] }
 0x577   : > { %v871_v40 = vadd.f32 1e-05, %v870_v39  ;;  %v987_v39 = vld [vmem:[#allocation19 + $0x360] sm:$0xff] }
 0x578   : > { %v3602_v47 = vpack.c.bf16 %v987_v39, %v954_v38  ;;  %v1057_v38 = vld [vmem:[#allocation19 + $0x590] sm:$0xff]  ;;  %v1026_v39 = vld [vmem:[#allocation19 + $0x498] sm:$0xff] }
 0x579   : > { %3998 = vrsqrt.f32 %v871_v40  ;;  %v956_v40 = vld [vmem:[#allocation19 + $0x268] sm:$0xff] }
 0x583   : > { %v3999_v41 = vpop.eup %3998 }
 0x584   : > { %v873_v44 = vmul.f32 %v3999_v41, %v4945_v43  ;;  %v951_v43 = vld [vmem:[#allocation19 + $0x240] sm:$0xff]  ;;  %v989_v41 = vld [vmem:[#allocation19 + $0x370] sm:$0xff] }
 0x585   : > { %v3588_v6 = vpack.c.bf16 %v984_v63, %v951_v43  ;;  %v1054_v43 = vld [vmem:[#allocation19 + $0x578] sm:$0xff] }
 0x586   : > { %v875_v48 = vmul.f32 %v874_v42, %v873_v44  ;;  %v3600_v42 = vpack.c.bf16 %v920_v33, %v887_v32  ;;  %v3616_v44 = vpack.c.bf16 %v922_v37, %v889_v36  ;;  %v1086_v63 = vld [vmem:[#allocation19 + $0x678] sm:$0xff]  ;;  %v3634_v33 = vpack.c.bf16 %v991_v26, %v958_v25  ;;  %v992_v36 = vld [vmem:[#allocation19 + $0x388] sm:$0xff]  ;;  %v1061_v25 = vld [vmem:[#allocation19 + $0x5b0] sm:$0xff] }
 0x587   : > { %v3610_v8 = vpack.c.bf16 %v1119_v1, %v1086_v63  ;;  %v990_v32 = vld [vmem:[#allocation19 + $0x378] sm:$0xff]  ;;  %v1024_v37 = vld [vmem:[#allocation19 + $0x488] sm:$0xff]  ;;  %v929_v63 = vld [vmem:[#allocation19 + $0x190] sm:$0xff] }
 0x588   : > { %v877_v55 = vadd.f32 %v876_v45, %v875_v48  ;;  %v953_v45 = vld [vmem:[#allocation19 + $0x250] sm:$0xff]  ;;  %v3618_v48 = vpack.c.bf16 %v989_v41, %v956_v40  ;;  %v1059_v40 = vld [vmem:[#allocation19 + $0x5a0] sm:$0xff]  ;;  %v898_v1 = vld [vmem:[#allocation19 + $0x98] sm:$0xff] }
 0x589   : > { %v1030_v26 = vld [vmem:[#allocation19 + $0x4b8] sm:$0xff] }
 0x58a   : > { %v4951_v60 = vmax.f32 %v877_v55, 0.0  ;;  %v3604_v55 = vpack.c.bf16 %v986_v46, %v953_v45  ;;  %v1056_v45 = vld [vmem:[#allocation19 + $0x588] sm:$0xff]  ;;  %v3638_v46 = vpack.c.bf16 %v1057_v38, %v1024_v37  ;;  %v1127_v37 = vld [vmem:[#allocation19 + $0x7c0] sm:$0xff] }
 0x58b   : > { %v1096_v38 = vld [vmem:[#allocation19 + $0x6c8] sm:$0xff] }
 0x58c   : > { %3305 = vmatmul.mubr.msk.f32.vlgmr.msra.gmra.mrb[2].mxu0 %vm787_vm3, %v4951_v60  ;;  %3306 = vmatmul.mubr.msk.f32.vlgmr.msra.gmra.mrb[2].mxu1 %vm787_vm3, %v4951_v60 }
 0x58d   : > { %3569 = vmatpush1.bf16.msra.mxu0 %v3568_v56  ;;  %3585 = vmatpush1.bf16.msra.mxu1 %v3584_v57  ;;  %v3620_v56 = vpack.c.bf16 %v988_v50, %v955_v49  ;;  %v1019_v57 = vld [vmem:[#allocation19 + $0x460] sm:$0xff]  ;;  %v1058_v49 = vld [vmem:[#allocation19 + $0x598] sm:$0xff] }
 0x58e   : > { %3571 = vmatprep.subr.bf16.mxu0 %v3570_v61  ;;  %3587 = vmatprep.subr.bf16.mxu1 %v3586_v62  ;;  %v3622_v61 = vpack.c.bf16 %v1055_v54, %v1022_v53  ;;  %v1021_v62 = vld [vmem:[#allocation19 + $0x470] sm:$0xff]  ;;  %v3608_v4 = vpack.c.bf16 %v1052_v58, %v1019_v57  ;;  %v1090_v50 = vld [vmem:[#allocation19 + $0x698] sm:$0xff] }
 0x58f   : > { %1527 = vmatprep.mubr.f32.mxu0 %v4489_v0  ;;  %1598 = vmatprep.mubr.f32.mxu1 %v4489_v0  ;;  %v1125_v53 = vld [vmem:[#allocation19 + $0x7b0] sm:$0xff]  ;;  %v1122_v57 = vld [vmem:[#allocation19 + $0x798] sm:$0xff]  ;;  %v3642_v58 = vpack.c.bf16 %v1123_v51, %v1090_v50 }
 0x590   : > { %v933_v50 = vld [vmem:[#allocation19 + $0x1b0] sm:$0xff]  ;;  %v902_v51 = vld [vmem:[#allocation19 + $0xb8] sm:$0xff] }
 0x591   : > { %3573 = vmatpush1.bf16.msra.mxu0 %v3572_v5  ;;  %3589 = vmatpush1.bf16.msra.mxu1 %v3588_v6  ;;  %v3624_v5 = vpack.c.bf16 %v1054_v43, %v1021_v62  ;;  %v1085_v6 = vld [vmem:[#allocation19 + $0x670] sm:$0xff]  ;;  %v1124_v62 = vld [vmem:[#allocation19 + $0x7a8] sm:$0xff] }
 0x592   : > { %3575 = vmatprep.subr.bf16.mxu0 %v3574_v9  ;;  %3591 = vmatprep.subr.bf16.mxu1 %v3590_v10  ;;  %v3626_v9 = vpack.c.bf16 %v1121_v3, %v1088_v2  ;;  %v1087_v10 = vld [vmem:[#allocation19 + $0x680] sm:$0xff]  ;;  %v3612_v17 = vpack.c.bf16 %v1118_v7, %v1085_v6  ;;  %v896_v43 = vld [vmem:[#allocation19 + $0x88] sm:$0xff] }
 0x593   : > { %v931_v2 = vld [vmem:[#allocation19 + $0x1a0] sm:$0xff]  ;;  %v928_v6 = vld [vmem:[#allocation19 + $0x188] sm:$0xff]  ;;  %v3662_v7 = vpack.c.bf16 %v929_v63, %v896_v43 }
 0x594   : > { %v999_v43 = vld [vmem:[#allocation19 + $0x3c0] sm:$0xff]  ;;  %v968_v63 = vld [vmem:[#allocation19 + $0x2c8] sm:$0xff] }
 0x595   : > { %3577 = vmatpush1.bf16.msra.mxu0 %v3576_v18  ;;  %3593 = vmatpush1.bf16.msra.mxu1 %v3592_v19  ;;  %v3628_v18 = vpack.c.bf16 %v1120_v11, %v1087_v10  ;;  %v891_v19 = vld [vmem:[#allocation19 + $0x60] sm:$0xff]  ;;  %v930_v10 = vld [vmem:[#allocation19 + $0x198] sm:$0xff] }
 0x596   : > { %3579 = vmatprep.subr.bf16.mxu0 %v3578_v22  ;;  %3595 = vmatprep.subr.bf16.mxu1 %v3594_v23  ;;  %v3646_v22 = vpack.c.bf16 %v927_v15, %v894_v14  ;;  %v893_v23 = vld [vmem:[#allocation19 + $0x70] sm:$0xff]  ;;  %v3632_v29 = vpack.c.bf16 %v924_v20, %v891_v19  ;;  %v962_v11 = vld [vmem:[#allocation19 + $0x298] sm:$0xff] }
 0x597   : > { %v997_v14 = vld [vmem:[#allocation19 + $0x3b0] sm:$0xff]  ;;  %v994_v19 = vld [vmem:[#allocation19 + $0x398] sm:$0xff]  ;;  %v3666_v20 = vpack.c.bf16 %v995_v12, %v962_v11 }
 0x598   : > { %v1065_v11 = vld [vmem:[#allocation19 + $0x5d0] sm:$0xff]  ;;  %v1034_v12 = vld [vmem:[#allocation19 + $0x4d8] sm:$0xff] }
 0x599   : > { %3581 = vmatpush1.bf16.msra.mxu0 %v3580_v30  ;;  %3597 = vmatpush1.bf16.msra.mxu1 %v3596_v31  ;;  %v3648_v30 = vpack.c.bf16 %v926_v24, %v893_v23  ;;  %v957_v31 = vld [vmem:[#allocation19 + $0x270] sm:$0xff]  ;;  %v996_v23 = vld [vmem:[#allocation19 + $0x3a8] sm:$0xff] }
 0x59a   : > { %3599 = vmatprep.subr.bf16.mxu0 %v3598_v34  ;;  %3615 = vmatprep.subr.bf16.mxu1 %v3614_v35  ;;  %v3650_v34 = vpack.c.bf16 %v993_v28, %v960_v27  ;;  %v959_v35 = vld [vmem:[#allocation19 + $0x280] sm:$0xff]  ;;  %v3636_v41 = vpack.c.bf16 %v990_v32, %v957_v31  ;;  %v1028_v24 = vld [vmem:[#allocation19 + $0x4a8] sm:$0xff] }
 0x59b   : > { %v1063_v27 = vld [vmem:[#allocation19 + $0x5c0] sm:$0xff]  ;;  %v1060_v31 = vld [vmem:[#allocation19 + $0x5a8] sm:$0xff]  ;;  %v3670_v32 = vpack.c.bf16 %v1061_v25, %v1028_v24 }
 0x59c   : > { %3307 = vmatmul.mubr.msk.f32.vlgmr.msra.gmra.mrb[4].mxu0 %vm787_vm3, %v4951_v60  ;;  %3308 = vmatmul.mubr.msk.f32.vlgmr.msra.gmra.mrb[4].mxu1 %vm787_vm3, %v4951_v60  ;;  %v1131_v24 = vld [vmem:[#allocation19 + $0x7e0] sm:$0xff]  ;;  %v1100_v25 = vld [vmem:[#allocation19 + $0x6e8] sm:$0xff] }
 0x59d   : > { %3601 = vmatpush1.bf16.msra.mxu0 %v3600_v42  ;;  %3617 = vmatpush1.bf16.msra.mxu1 %v3616_v44  ;;  %v3652_v42 = vpack.c.bf16 %v992_v36, %v959_v35  ;;  %v1023_v44 = vld [vmem:[#allocation19 + $0x480] sm:$0xff]  ;;  %v1062_v35 = vld [vmem:[#allocation19 + $0x5b8] sm:$0xff] }
 0x59e   : > { %3603 = vmatprep.subr.bf16.mxu0 %v3602_v47  ;;  %3619 = vmatprep.subr.bf16.mxu1 %v3618_v48  ;;  %v3654_v47 = vpack.c.bf16 %v1059_v40, %v1026_v39  ;;  %v1025_v48 = vld [vmem:[#allocation19 + $0x490] sm:$0xff]  ;;  %v3640_v54 = vpack.c.bf16 %v1056_v45, %v1023_v44  ;;  %v1094_v36 = vld [vmem:[#allocation19 + $0x6b8] sm:$0xff] }
 0x59f   : > { %1669 = vmatprep.mubr.f32.mxu0 %v4489_v0  ;;  %1740 = vmatprep.mubr.f32.mxu1 %v4489_v0  ;;  %v1129_v39 = vld [vmem:[#allocation19 + $0x7d0] sm:$0xff]  ;;  %v1126_v44 = vld [vmem:[#allocation19 + $0x7b8] sm:$0xff]  ;;  %v3674_v45 = vpack.c.bf16 %v1127_v37, %v1094_v36 }
 0x5a0   : > { %v937_v36 = vld [vmem:[#allocation19 + $0x1d0] sm:$0xff]  ;;  %v906_v37 = vld [vmem:[#allocation19 + $0xd8] sm:$0xff] }
 0x5a1   : > { %3605 = vmatpush1.bf16.msra.mxu0 %v3604_v55  ;;  %3621 = vmatpush1.bf16.msra.mxu1 %v3620_v56  ;;  %v3656_v55 = vpack.c.bf16 %v1058_v49, %v1025_v48  ;;  %v1089_v56 = vld [vmem:[#allocation19 + $0x690] sm:$0xff]  ;;  %v1128_v48 = vld [vmem:[#allocation19 + $0x7c8] sm:$0xff] }
 0x5a2   : > { %3607 = vmatprep.subr.bf16.mxu0 %v3606_v59  ;;  %3623 = vmatprep.subr.bf16.mxu1 %v3622_v61  ;;  %v3658_v59 = vpack.c.bf16 %v1125_v53, %v1092_v52  ;;  %v1091_v61 = vld [vmem:[#allocation19 + $0x6a0] sm:$0xff]  ;;  %v3644_v3 = vpack.c.bf16 %v1122_v57, %v1089_v56  ;;  %v900_v49 = vld [vmem:[#allocation19 + $0xa8] sm:$0xff] }
 0x5a3   : > { %v935_v52 = vld [vmem:[#allocation19 + $0x1c0] sm:$0xff]  ;;  %v932_v56 = vld [vmem:[#allocation19 + $0x1a8] sm:$0xff]  ;;  %v3694_v57 = vpack.c.bf16 %v933_v50, %v900_v49 }
 0x5a4   : > { %v1003_v49 = vld [vmem:[#allocation19 + $0x3e0] sm:$0xff]  ;;  %v972_v50 = vld [vmem:[#allocation19 + $0x2e8] sm:$0xff] }
 0x5a5   : > { %3609 = vmatpush1.bf16.msra.mxu0 %v3608_v4  ;;  %3625 = vmatpush1.bf16.msra.mxu1 %v3624_v5  ;;  %v3660_v4 = vpack.c.bf16 %v1124_v62, %v1091_v61  ;;  %v895_v5 = vld [vmem:[#allocation19 + $0x80] sm:$0xff]  ;;  %v934_v61 = vld [vmem:[#allocation19 + $0x1b8] sm:$0xff] }
 0x5a6   : > { %3611 = vmatprep.subr.bf16.mxu0 %v3610_v8  ;;  %3627 = vmatprep.subr.bf16.mxu1 %v3626_v9  ;;  %v3678_v8 = vpack.c.bf16 %v931_v2, %v898_v1  ;;  %v897_v9 = vld [vmem:[#allocation19 + $0x90] sm:$0xff]  ;;  %v3664_v15 = vpack.c.bf16 %v928_v6, %v895_v5  ;;  %v966_v62 = vld [vmem:[#allocation19 + $0x2b8] sm:$0xff] }
 0x5a7   : > { %v1001_v1 = vld [vmem:[#allocation19 + $0x3d0] sm:$0xff]  ;;  %v998_v5 = vld [vmem:[#allocation19 + $0x3b8] sm:$0xff]  ;;  %v3698_v6 = vpack.c.bf16 %v999_v43, %v966_v62 }
 0x5a8   : > { %v1069_v62 = vld [vmem:[#allocation19 + $0x5f0] sm:$0xff]  ;;  %v1038_v43 = vld [vmem:[#allocation19 + $0x4f8] sm:$0xff] }
 0x5a9   : > { %3613 = vmatpush1.bf16.msra.mxu0 %v3612_v17  ;;  %3629 = vmatpush1.bf16.msra.mxu1 %v3628_v18  ;;  %v3680_v17 = vpack.c.bf16 %v930_v10, %v897_v9  ;;  %v961_v18 = vld [vmem:[#allocation19 + $0x290] sm:$0xff]  ;;  %v1000_v9 = vld [vmem:[#allocation19 + $0x3c8] sm:$0xff] }
 0x5aa   : > { %3631 = vmatprep.subr.bf16.mxu0 %v3630_v21  ;;  %3647 = vmatprep.subr.bf16.mxu1 %v3646_v22  ;;  %v3682_v21 = vpack.c.bf16 %v997_v14, %v964_v13  ;;  %v963_v22 = vld [vmem:[#allocation19 + $0x2a0] sm:$0xff]  ;;  %v3668_v28 = vpack.c.bf16 %v994_v19, %v961_v18  ;;  %v1032_v10 = vld [vmem:[#allocation19 + $0x4c8] sm:$0xff] }
 0x5ab   : > { %v1067_v13 = vld [vmem:[#allocation19 + $0x5e0] sm:$0xff]  ;;  %v1064_v18 = vld [vmem:[#allocation19 + $0x5c8] sm:$0xff]  ;;  %v3702_v19 = vpack.c.bf16 %v1065_v11, %v1032_v10 }
 0x5ac   : > { %3309 = vmatmul.mubr.msk.f32.vlgmr.msra.gmra.mrb[6].mxu0 %vm787_vm3, %v4951_v60  ;;  %3310 = vmatmul.mubr.msk.f32.vlgmr.msra.gmra.mrb[6].mxu1 %vm787_vm3, %v4951_v60  ;;  %v1135_v10 = vld [vmem:[#allocation19 + $0x800] sm:$0xff]  ;;  %v1104_v11 = vld [vmem:[#allocation19 + $0x708] sm:$0xff] }
 0x5ad   : > { %3633 = vmatpush1.bf16.msra.mxu0 %v3632_v29  ;;  %3649 = vmatpush1.bf16.msra.mxu1 %v3648_v30  ;;  %v3684_v29 = vpack.c.bf16 %v996_v23, %v963_v22  ;;  %v1027_v30 = vld [vmem:[#allocation19 + $0x4a0] sm:$0xff]  ;;  %v1066_v22 = vld [vmem:[#allocation19 + $0x5d8] sm:$0xff] }
 0x5ae   : > { %3635 = vmatprep.subr.bf16.mxu0 %v3634_v33  ;;  %3651 = vmatprep.subr.bf16.mxu1 %v3650_v34  ;;  %v3686_v33 = vpack.c.bf16 %v1063_v27, %v1030_v26  ;;  %v1029_v34 = vld [vmem:[#allocation19 + $0x4b0] sm:$0xff]  ;;  %v3672_v40 = vpack.c.bf16 %v1060_v31, %v1027_v30  ;;  %v1098_v23 = vld [vmem:[#allocation19 + $0x6d8] sm:$0xff] }
 0x5af   : > { %1811 = vmatprep.mubr.f32.mxu0 %v4489_v0  ;;  %1882 = vmatprep.mubr.f32.mxu1 %v4489_v0  ;;  %v1133_v26 = vld [vmem:[#allocation19 + $0x7f0] sm:$0xff]  ;;  %v1130_v30 = vld [vmem:[#allocation19 + $0x7d8] sm:$0xff]  ;;  %v3706_v31 = vpack.c.bf16 %v1131_v24, %v1098_v23 }
 0x5b0   : > { %v941_v23 = vld [vmem:[#allocation19 + $0x1f0] sm:$0xff]  ;;  %v910_v24 = vld [vmem:[#allocation19 + $0xf8] sm:$0xff] }
 0x5b1   : > { %3637 = vmatpush1.bf16.msra.mxu0 %v3636_v41  ;;  %3653 = vmatpush1.bf16.msra.mxu1 %v3652_v42  ;;  %v3688_v41 = vpack.c.bf16 %v1062_v35, %v1029_v34  ;;  %v1093_v42 = vld [vmem:[#allocation19 + $0x6b0] sm:$0xff]  ;;  %v1132_v34 = vld [vmem:[#allocation19 + $0x7e8] sm:$0xff] }
 0x5b2   : > { %3639 = vmatprep.subr.bf16.mxu0 %v3638_v46  ;;  %3655 = vmatprep.subr.bf16.mxu1 %v3654_v47  ;;  %v3690_v46 = vpack.c.bf16 %v1129_v39, %v1096_v38  ;;  %v1095_v47 = vld [vmem:[#allocation19 + $0x6c0] sm:$0xff]  ;;  %v3676_v53 = vpack.c.bf16 %v1126_v44, %v1093_v42  ;;  %v904_v35 = vld [vmem:[#allocation19 + $0xc8] sm:$0xff] }
 0x5b3   : > { %v939_v38 = vld [vmem:[#allocation19 + $0x1e0] sm:$0xff]  ;;  %v936_v42 = vld [vmem:[#allocation19 + $0x1c8] sm:$0xff]  ;;  %v3726_v44 = vpack.c.bf16 %v937_v36, %v904_v35 }
 0x5b4   : > { %v1007_v35 = vld [vmem:[#allocation19 + $0x400] sm:$0xff]  ;;  %v976_v36 = vld [vmem:[#allocation19 + $0x308] sm:$0xff] }
 0x5b5   : > { %3641 = vmatpush1.bf16.msra.mxu0 %v3640_v54  ;;  %3657 = vmatpush1.bf16.msra.mxu1 %v3656_v55  ;;  %v3692_v54 = vpack.c.bf16 %v1128_v48, %v1095_v47  ;;  %v899_v55 = vld [vmem:[#allocation19 + $0xa0] sm:$0xff]  ;;  %v938_v47 = vld [vmem:[#allocation19 + $0x1d8] sm:$0xff] }
 0x5b6   : > { %3643 = vmatprep.subr.bf16.mxu0 %v3642_v58  ;;  %3659 = vmatprep.subr.bf16.mxu1 %v3658_v59  ;;  %v3710_v58 = vpack.c.bf16 %v935_v52, %v902_v51  ;;  %v901_v59 = vld [vmem:[#allocation19 + $0xb0] sm:$0xff]  ;;  %v3696_v2 = vpack.c.bf16 %v932_v56, %v899_v55  ;;  %v970_v48 = vld [vmem:[#allocation19 + $0x2d8] sm:$0xff] }
 0x5b7   : > { %v1005_v51 = vld [vmem:[#allocation19 + $0x3f0] sm:$0xff]  ;;  %v1002_v55 = vld [vmem:[#allocation19 + $0x3d8] sm:$0xff]  ;;  %v3730_v56 = vpack.c.bf16 %v1003_v49, %v970_v48 }
 0x5b8   : > { %v1073_v48 = vld [vmem:[#allocation19 + $0x610] sm:$0xff]  ;;  %v1042_v49 = vld [vmem:[#allocation19 + $0x518] sm:$0xff] }
 0x5b9   : > { %3645 = vmatpush1.bf16.msra.mxu0 %v3644_v3  ;;  %3661 = vmatpush1.bf16.msra.mxu1 %v3660_v4  ;;  %v3712_v3 = vpack.c.bf16 %v934_v61, %v901_v59  ;;  %v965_v4 = vld [vmem:[#allocation19 + $0x2b0] sm:$0xff]  ;;  %v1004_v59 = vld [vmem:[#allocation19 + $0x3e8] sm:$0xff] }
 0x5ba   : > { %3663 = vmatprep.subr.bf16.mxu0 %v3662_v7  ;;  %3679 = vmatprep.subr.bf16.mxu1 %v3678_v8  ;;  %v3714_v7 = vpack.c.bf16 %v1001_v1, %v968_v63  ;;  %v967_v8 = vld [vmem:[#allocation19 + $0x2c0] sm:$0xff]  ;;  %v3700_v14 = vpack.c.bf16 %v998_v5, %v965_v4  ;;  %v1036_v61 = vld [vmem:[#allocation19 + $0x4e8] sm:$0xff] }
 0x5bb   : > { %v1071_v63 = vld [vmem:[#allocation19 + $0x600] sm:$0xff]  ;;  %v1068_v4 = vld [vmem:[#allocation19 + $0x5e8] sm:$0xff]  ;;  %v3734_v5 = vpack.c.bf16 %v1069_v62, %v1036_v61 }
 0x5bc   : > { %3311 = vmatmul.mubr.msk.f32.vlgmr.msra.gmra.mrb[8].mxu0 %vm787_vm3, %v4951_v60  ;;  %3312 = vmatmul.mubr.msk.f32.vlgmr.msra.gmra.mrb[8].mxu1 %vm787_vm3, %v4951_v60  ;;  %v1139_v61 = vld [vmem:[#allocation19 + $0x820] sm:$0xff]  ;;  %v1108_v62 = vld [vmem:[#allocation19 + $0x728] sm:$0xff] }
 0x5bd   : > { %3665 = vmatpush1.bf16.msra.mxu0 %v3664_v15  ;;  %3681 = vmatpush1.bf16.msra.mxu1 %v3680_v17  ;;  %v3716_v15 = vpack.c.bf16 %v1000_v9, %v967_v8  ;;  %v1031_v17 = vld [vmem:[#allocation19 + $0x4c0] sm:$0xff]  ;;  %v1070_v8 = vld [vmem:[#allocation19 + $0x5f8] sm:$0xff] }
 0x5be   : > { %3667 = vmatprep.subr.bf16.mxu0 %v3666_v20  ;;  %3683 = vmatprep.subr.bf16.mxu1 %v3682_v21  ;;  %v3718_v20 = vpack.c.bf16 %v1067_v13, %v1034_v12  ;;  %v1033_v21 = vld [vmem:[#allocation19 + $0x4d0] sm:$0xff]  ;;  %v3704_v27 = vpack.c.bf16 %v1064_v18, %v1031_v17  ;;  %v1102_v9 = vld [vmem:[#allocation19 + $0x6f8] sm:$0xff] }
 0x5bf   : > { %1953 = vmatprep.mubr.f32.mxu0 %v4489_v0  ;;  %2024 = vmatprep.mubr.f32.mxu1 %v4489_v0  ;;  %v1137_v12 = vld [vmem:[#allocation19 + $0x810] sm:$0xff]  ;;  %v1134_v17 = vld [vmem:[#allocation19 + $0x7f8] sm:$0xff]  ;;  %v3738_v18 = vpack.c.bf16 %v1135_v10, %v1102_v9  ;;  %v911_v10 = vld [vmem:[#allocation19 + $0x100] sm:$0xff] }
 0x5c1   : > { %3669 = vmatpush1.bf16.msra.mxu0 %v3668_v28  ;;  %3685 = vmatpush1.bf16.msra.mxu1 %v3684_v29  ;;  %v3720_v28 = vpack.c.bf16 %v1066_v22, %v1033_v21  ;;  %v1097_v29 = vld [vmem:[#allocation19 + $0x6d0] sm:$0xff]  ;;  %v1136_v21 = vld [vmem:[#allocation19 + $0x808] sm:$0xff] }
 0x5c2   : > { %3671 = vmatprep.subr.bf16.mxu0 %v3670_v32  ;;  %3687 = vmatprep.subr.bf16.mxu1 %v3686_v33  ;;  %v3722_v32 = vpack.c.bf16 %v1133_v26, %v1100_v25  ;;  %v1099_v33 = vld [vmem:[#allocation19 + $0x6e0] sm:$0xff]  ;;  %v3708_v39 = vpack.c.bf16 %v1130_v30, %v1097_v29  ;;  %v908_v22 = vld [vmem:[#allocation19 + $0xe8] sm:$0xff] }
 0x5c3   : > { %v943_v25 = vld [vmem:[#allocation19 + $0x200] sm:$0xff]  ;;  %v940_v29 = vld [vmem:[#allocation19 + $0x1e8] sm:$0xff]  ;;  %v3758_v30 = vpack.c.bf16 %v941_v23, %v908_v22 }
 0x5c5   : > { %3673 = vmatpush1.bf16.msra.mxu0 %v3672_v40  ;;  %3689 = vmatpush1.bf16.msra.mxu1 %v3688_v41  ;;  %v3724_v40 = vpack.c.bf16 %v1132_v34, %v1099_v33  ;;  %v903_v41 = vld [vmem:[#allocation19 + $0xc0] sm:$0xff]  ;;  %v942_v33 = vld [vmem:[#allocation19 + $0x1f8] sm:$0xff] }
 0x5c6   : > { %3675 = vmatprep.subr.bf16.mxu0 %v3674_v45  ;;  %3691 = vmatprep.subr.bf16.mxu1 %v3690_v46  ;;  %v3742_v45 = vpack.c.bf16 %v939_v38, %v906_v37  ;;  %v905_v46 = vld [vmem:[#allocation19 + $0xd0] sm:$0xff]  ;;  %v3728_v52 = vpack.c.bf16 %v936_v42, %v903_v41  ;;  %v974_v34 = vld [vmem:[#allocation19 + $0x2f8] sm:$0xff] }
 0x5c7   : > { %v1009_v37 = vld [vmem:[#allocation19 + $0x410] sm:$0xff]  ;;  %v1006_v41 = vld [vmem:[#allocation19 + $0x3f8] sm:$0xff]  ;;  %v3762_v42 = vpack.c.bf16 %v1007_v35, %v974_v34 }
 0x5c8   : > { %v2584_v34 = vld [vmem:[%s5024_s13 + $0x70] sm:$0xff] }
 0x5c9   : > { %3677 = vmatpush1.bf16.msra.mxu0 %v3676_v53  ;;  %3693 = vmatpush1.bf16.msra.mxu1 %v3692_v54  ;;  %v3744_v53 = vpack.c.bf16 %v938_v47, %v905_v46  ;;  %v969_v54 = vld [vmem:[#allocation19 + $0x2d0] sm:$0xff]  ;;  %v1008_v46 = vld [vmem:[#allocation19 + $0x408] sm:$0xff] }
 0x5ca   : > { %3695 = vmatprep.subr.bf16.mxu0 %v3694_v57  ;;  %3711 = vmatprep.subr.bf16.mxu1 %v3710_v58  ;;  %v3746_v57 = vpack.c.bf16 %v1005_v51, %v972_v50  ;;  %v971_v58 = vld [vmem:[#allocation19 + $0x2e0] sm:$0xff]  ;;  %v3732_v1 = vpack.c.bf16 %v1002_v55, %v969_v54  ;;  %v1040_v47 = vld [vmem:[#allocation19 + $0x508] sm:$0xff] }
 0x5cb   : > { %v1075_v50 = vld [vmem:[#allocation19 + $0x620] sm:$0xff]  ;;  %v1072_v54 = vld [vmem:[#allocation19 + $0x608] sm:$0xff]  ;;  %v3766_v55 = vpack.c.bf16 %v1073_v48, %v1040_v47 }
 0x5cc   : > { %3313 = vmatmul.mubr.msk.f32.vlgmr.msra.gmra.mrb[10].mxu0 %vm787_vm3, %v4951_v60  ;;  %3314 = vmatmul.mubr.msk.f32.vlgmr.msra.gmra.mrb[10].mxu1 %vm787_vm3, %v4951_v60 }
 0x5cd   : > { %3697 = vmatpush1.bf16.msra.mxu0 %v3696_v2  ;;  %3713 = vmatpush1.bf16.msra.mxu1 %v3712_v3  ;;  %v3748_v2 = vpack.c.bf16 %v1004_v59, %v971_v58  ;;  %v1035_v3 = vld [vmem:[#allocation19 + $0x4e0] sm:$0xff]  ;;  %v1074_v58 = vld [vmem:[#allocation19 + $0x618] sm:$0xff] }
 0x5ce   : > { %3699 = vmatprep.subr.bf16.mxu0 %v3698_v6  ;;  %3715 = vmatprep.subr.bf16.mxu1 %v3714_v7  ;;  %v3750_v6 = vpack.c.bf16 %v1071_v63, %v1038_v43  ;;  %v1037_v7 = vld [vmem:[#allocation19 + $0x4f0] sm:$0xff]  ;;  %v3736_v13 = vpack.c.bf16 %v1068_v4, %v1035_v3  ;;  %v1106_v59 = vld [vmem:[#allocation19 + $0x718] sm:$0xff] }
 0x5cf   : > { %2095 = vmatprep.mubr.f32.mxu0 %v4489_v0  ;;  %2166 = vmatprep.mubr.f32.mxu1 %v4489_v0  ;;  %v1141_v43 = vld [vmem:[#allocation19 + $0x830] sm:$0xff]  ;;  %v3770_v3 = vpack.c.bf16 %v1139_v61, %v1106_v59 }
 0x5d0   : > { %v3786_v4 = vpack.c.bf16 %v1141_v43, %v1108_v62 }
 0x5d1   : > { %3701 = vmatpush1.bf16.msra.mxu0 %v3700_v14  ;;  %3717 = vmatpush1.bf16.msra.mxu1 %v3716_v15  ;;  %v3752_v14 = vpack.c.bf16 %v1070_v8, %v1037_v7  ;;  %v1101_v15 = vld [vmem:[#allocation19 + $0x6f0] sm:$0xff]  ;;  %v1140_v7 = vld [vmem:[#allocation19 + $0x828] sm:$0xff] }
 0x5d2   : > { %3703 = vmatprep.subr.bf16.mxu0 %v3702_v19  ;;  %3719 = vmatprep.subr.bf16.mxu1 %v3718_v20  ;;  %v3754_v19 = vpack.c.bf16 %v1137_v12, %v1104_v11  ;;  %v1103_v20 = vld [vmem:[#allocation19 + $0x700] sm:$0xff]  ;;  %v3740_v26 = vpack.c.bf16 %v1134_v17, %v1101_v15  ;;  %v944_v11 = vld [vmem:[#allocation19 + $0x208] sm:$0xff] }
 0x5d3   : > { %v3791_v12 = vpack.c.bf16 %v944_v11, %v911_v10  ;;  %v1043_v17 = vld [vmem:[#allocation19 + $0x520] sm:$0xff] }
 0x5d5   : > { %3705 = vmatpush1.bf16.msra.mxu0 %v3704_v27  ;;  %3721 = vmatpush1.bf16.msra.mxu1 %v3720_v28  ;;  %v3756_v27 = vpack.c.bf16 %v1136_v21, %v1103_v20  ;;  %v907_v28 = vld [vmem:[#allocation19 + $0xe0] sm:$0xff]  ;;  %v1109_v20 = vld [vmem:[#allocation19 + $0x730] sm:$0xff]  ;;  %v1142_v21 = vld [vmem:[#allocation19 + $0x838] sm:$0xff] }
 0x5d6   : > { %3707 = vmatprep.subr.bf16.mxu0 %v3706_v31  ;;  %3723 = vmatprep.subr.bf16.mxu1 %v3722_v32  ;;  %v3774_v31 = vpack.c.bf16 %v943_v25, %v910_v24  ;;  %v909_v32 = vld [vmem:[#allocation19 + $0xf0] sm:$0xff]  ;;  %v3760_v38 = vpack.c.bf16 %v940_v29, %v907_v28  ;;  %v3800_v22 = vpack.c.bf16 %v1142_v21, %v1109_v20 }
 0x5d9   : > { %3709 = vmatpush1.bf16.msra.mxu0 %v3708_v39  ;;  %3725 = vmatpush1.bf16.msra.mxu1 %v3724_v40  ;;  %v3776_v39 = vpack.c.bf16 %v942_v33, %v909_v32  ;;  %v973_v40 = vld [vmem:[#allocation19 + $0x2f0] sm:$0xff] }
 0x5da   : > { %3727 = vmatprep.subr.bf16.mxu0 %v3726_v44  ;;  %3743 = vmatprep.subr.bf16.mxu1 %v3742_v45  ;;  %v3778_v44 = vpack.c.bf16 %v1009_v37, %v976_v36  ;;  %v975_v45 = vld [vmem:[#allocation19 + $0x300] sm:$0xff]  ;;  %v3764_v51 = vpack.c.bf16 %v1006_v41, %v973_v40  ;;  %v2570_v33 = vld [vmem:[%s5024_s13] sm:$0xff] }
 0x5dc   : > { %3315 = vmatmul.mubr.msk.f32.vlgmr.msra.gmra.mrb[12].mxu0 %vm787_vm3, %v4951_v60  ;;  %3316 = vmatmul.mubr.msk.f32.vlgmr.msra.gmra.mrb[12].mxu1 %vm787_vm3, %v4951_v60 }
 0x5dd   : > { %3729 = vmatpush1.bf16.msra.mxu0 %v3728_v52  ;;  %3745 = vmatpush1.bf16.msra.mxu1 %v3744_v53  ;;  %v3780_v52 = vpack.c.bf16 %v1008_v46, %v975_v45  ;;  %v1039_v53 = vld [vmem:[#allocation19 + $0x500] sm:$0xff] }
 0x5de   : > { %3731 = vmatprep.subr.bf16.mxu0 %v3730_v56  ;;  %3747 = vmatprep.subr.bf16.mxu1 %v3746_v57  ;;  %v3782_v56 = vpack.c.bf16 %v1075_v50, %v1042_v49  ;;  %v1041_v57 = vld [vmem:[#allocation19 + $0x510] sm:$0xff]  ;;  %v3768_v63 = vpack.c.bf16 %v1072_v54, %v1039_v53 }
 0x5df   : > { %2237 = vmatprep.mubr.f32.mxu0 %v4489_v0  ;;  %2308 = vmatprep.mubr.f32.mxu1 %v4489_v0 }
 0x5e1   : > { %3733 = vmatpush1.bf16.msra.mxu0 %v3732_v1  ;;  %3749 = vmatpush1.bf16.msra.mxu1 %v3748_v2  ;;  %v3784_v1 = vpack.c.bf16 %v1074_v58, %v1041_v57  ;;  %v1105_v2 = vld [vmem:[#allocation19 + $0x710] sm:$0xff]  ;;  %v1144_v58 = vld [vmem:[#allocation21 + $0x8] sm:$0xff] }
 0x5e2   : > { %3735 = vmatprep.subr.bf16.mxu0 %v3734_v5  ;;  %3751 = vmatprep.subr.bf16.mxu1 %v3750_v6  ;;  %v1138_v5 = vld [vmem:[#allocation19 + $0x818] sm:$0xff]  ;;  %v1107_v6 = vld [vmem:[#allocation19 + $0x720] sm:$0xff] }
 0x5e3   : > { %v3772_v8 = vpack.c.bf16 %v1138_v5, %v1105_v2  ;;  %v3788_v9 = vpack.c.bf16 %v1140_v7, %v1107_v6 }
 0x5e5   : > { %3737 = vmatpush1.bf16.msra.mxu0 %v3736_v13  ;;  %3753 = vmatpush1.bf16.msra.mxu1 %v3752_v14  ;;  %v977_v13 = vld [vmem:[#allocation19 + $0x310] sm:$0xff]  ;;  %v1010_v14 = vld [vmem:[#allocation19 + $0x418] sm:$0xff] }
 0x5e6   : > { %3739 = vmatprep.subr.bf16.mxu0 %v3738_v18  ;;  %3755 = vmatprep.subr.bf16.mxu1 %v3754_v19  ;;  %v3794_v15 = vpack.c.bf16 %v1010_v14, %v977_v13  ;;  %v1076_v18 = vld [vmem:[#allocation19 + $0x628] sm:$0xff] }
 0x5e7   : > { %v3797_v19 = vpack.c.bf16 %v1076_v18, %v1043_v17 }
 0x5e9   : > { %3741 = vmatpush1.bf16.msra.mxu0 %v3740_v26  ;;  %3757 = vmatpush1.bf16.msra.mxu1 %v3756_v27  ;;  %v1143_v26 = vld [vmem:[#allocation21] sm:$0xff] }
 0x5ea   : > { %3759 = vmatprep.subr.bf16.mxu0 %v3758_v30  ;;  %3775 = vmatprep.subr.bf16.mxu1 %v3774_v31 }
 0x5ec   : > { %3317 = vmatmul.mubr.msk.f32.vlgmr.msra.gmra.mrb[14].mxu0 %vm787_vm3, %v4951_v60  ;;  %3318 = vmatmul.mubr.msk.f32.vlgmr.msra.gmra.mrb[14].mxu1 %vm787_vm3, %v4951_v60 }
 0x5ed   : > { %3761 = vmatpush1.bf16.msra.mxu0 %v3760_v38  ;;  %3777 = vmatpush1.bf16.msra.mxu1 %v3776_v39 }
 0x5ee   : > { %3763 = vmatprep.subr.bf16.mxu0 %v3762_v42  ;;  %3779 = vmatprep.subr.bf16.mxu1 %v3778_v44 }
 0x5ef   : > { %2379 = vmatprep.mubr.f32.mxu0 %v4489_v0  ;;  %2450 = vmatprep.mubr.f32.mxu1 %v4489_v0 }
 0x5f1   : > { %3765 = vmatpush1.bf16.msra.mxu0 %v3764_v51  ;;  %3781 = vmatpush1.bf16.msra.mxu1 %v3780_v52 }
 0x5f2   : > { %3767 = vmatprep.subr.bf16.mxu0 %v3766_v55  ;;  %3783 = vmatprep.subr.bf16.mxu1 %v3782_v56 }
 0x5f5   : > { %3769 = vmatpush1.bf16.msra.mxu0 %v3768_v63  ;;  %3785 = vmatpush1.bf16.msra.mxu1 %v3784_v1 }
 0x5f6   : > { %3771 = vmatprep.subr.bf16.mxu0 %v3770_v3  ;;  %3787 = vmatprep.subr.bf16.mxu1 %v3786_v4 }
 0x5f9   : > { %3773 = vmatpush1.bf16.msra.mxu0 %v3772_v8  ;;  %3789 = vmatpush1.bf16.msra.mxu1 %v3788_v9 }
 0x5fa   : > { %3790 = vmatprep.subr.bf16.mxu0 %v4491_v16 }
 0x5fc   : > { %3319 = vmatmul.mubr.msk.f32.vlgmr.msra.gmra.mrb[16].mxu0 %vm787_vm3, %v4951_v60  ;;  %3320 = vmatmul.mubr.msk.f32.vlgmr.msra.gmra.mrb[16].mxu1 %vm787_vm3, %v4951_v60 }
 0x5fd   : > { %3792 = vmatpush3.bf16.msra.mxu0 %v3791_v12  ;;  %3463 = vmatprep.mubr.msk.f32.mxu0 %vm4490_vm0, %v4489_v0  ;;  %v1153_v0 = vlaneseq }
 0x5fe   : > { %3793 = vmatprep.subr.bf16.mxu0 %v4491_v16  ;;  %3495 = vmatprep.mubr.msk.f32.mxu1 %vm2613_vm4, %v2584_v34 }
 0x5ff   : > { %v1154_v23 = vshrl.u32 %v1153_v0, 7 }
 0x601   : > { %3795 = vmatpush3.bf16.msra.mxu0 %v3794_v15  ;;  %v5007_v24 = vsub.s32 0, %v1154_v23  ;;  %v5009_v25 = vsub.s32 2, %v1154_v23  ;;  %v5011_v27 = vsub.s32 1, %v1154_v23  ;;  %v5013_v28 = vsub.s32 3, %v1154_v23 }
 0x602   : > { %3796 = vmatprep.subr.bf16.mxu0 %v4491_v16  ;;  %v5030_v41 = vsub.s32 4, %v1154_v23  ;;  %v5032_v42 = vsub.s32 6, %v1154_v23  ;;  %v5034_v44 = vsub.s32 5, %v1154_v23  ;;  %v5036_v45 = vsub.s32 7, %v1154_v23 }
 0x603   : > { %v1156_v29 = vrot.slane %v1143_v26, %v5007_v24  ;;  %v1160_v30 = vrot.slane %v1143_v26, %v5011_v27  ;;  %v1188_v61 = vrot.slane %v1144_v58, %v5007_v24  ;;  %v1196_v62 = vrot.slane %v1144_v58, %v5009_v25 }
 0x604   : > { %v1172_v46 = vrot.slane %v1143_v26, %v5030_v41  ;;  %v1180_v47 = vrot.slane %v1143_v26, %v5032_v42  ;;  %v1176_v48 = vrot.slane %v1143_v26, %v5034_v44  ;;  %v1184_v49 = vrot.slane %v1143_v26, %v5036_v45 }
 0x605   : > { %3798 = vmatpush3.bf16.msra.mxu0 %v3797_v19  ;;  %v1192_v43 = vrot.slane %v1144_v58, %v5011_v27  ;;  %v1200_v63 = vrot.slane %v1144_v58, %v5013_v28  ;;  %v1204_v9 = vrot.slane %v1144_v58, %v5030_v41  ;;  %v1212_v10 = vrot.slane %v1144_v58, %v5032_v42 }
 0x606   : > { %3799 = vmatprep.subr.bf16.mxu0 %v4491_v16  ;;  %v1164_v16 = vrot.slane %v1143_v26, %v5009_v25  ;;  %v1208_v11 = vrot.slane %v1144_v58, %v5034_v44  ;;  %v1216_v12 = vrot.slane %v1144_v58, %v5036_v45 }
 0x609   : > { %3801 = vmatpush3.bf16.msra.mxu0 %v3800_v22  ;;  %v1145_v22 = vld [vmem:[#allocation21 + $0x10] sm:$0xff] }
 0x60c   : > { %3464 = vmatmul.mubr.msk.f32.vlgmr.msra.gmra.mrb[18].mxu0 %vm787_vm3, %v4951_v60  ;;  %v1168_v60 = vrot.slane %v1143_v26, %v5013_v28  ;;  %v1220_v26 = vrot.slane %v1145_v22, %v5007_v24 }
 0x60d   : > { %3474 = vmatprep.mubr.msk.f32.mxu0 %vm2613_vm4, %v2570_v33 }
 0x65f   : > { %v1387_v31 = vpop.f32.mrb[2].mxu0  ;;  %v1458_v32 = vpop.f32.mrb[2].mxu1 }
 0x660   : > { %v1388_v35 = vadd.f32 %v1387_v31, %v1156_v29  ;;  %v1459_v36 = vadd.f32 %v1458_v32, %v1164_v16  ;;  %v1389_v37 = vpop.f32.mrb[3].mxu0  ;;  %v1460_v38 = vpop.f32.mrb[3].mxu1  ;;  %v1228_v29 = vrot.slane %v1145_v22, %v5009_v25  ;;  %v1224_v16 = vrot.slane %v1145_v22, %v5011_v27 }
 0x661   : > { %v1390_v39 = vadd.f32 %v1389_v37, %v1160_v30  ;;  %v1461_v40 = vadd.f32 %v1460_v38, %v1168_v60  ;;  %v1232_v30 = vrot.slane %v1145_v22, %v5013_v28  ;;  %v1236_v38 = vrot.slane %v1145_v22, %v5030_v41 }
 0x662   : > { %2527 = vst [vmem:[#allocation2] sm:$0x1] %v1388_v35  ;;  %2529 = vst [vmem:[#allocation2 + $0x2] sm:$0x1] %v1459_v36 }
 0x663   : > { %2528 = vst [vmem:[#allocation2 + $0x1] sm:$0x1] %v1390_v39  ;;  %2530 = vst [vmem:[#allocation2 + $0x3] sm:$0x1] %v1461_v40  ;;  %v1244_v39 = vrot.slane %v1145_v22, %v5032_v42  ;;  %v1240_v40 = vrot.slane %v1145_v22, %v5034_v44 }
 0x66f   : > { %v1529_v50 = vpop.f32.mrb[4].mxu0  ;;  %v1600_v51 = vpop.f32.mrb[4].mxu1 }
 0x670   : > { %v1530_v52 = vadd.f32 %v1529_v50, %v1172_v46  ;;  %v1601_v53 = vadd.f32 %v1600_v51, %v1180_v47  ;;  %v1531_v54 = vpop.f32.mrb[5].mxu0  ;;  %v1602_v55 = vpop.f32.mrb[5].mxu1  ;;  %v1248_v46 = vrot.slane %v1145_v22, %v5036_v45  ;;  %v2587_v22 = vld [vmem:[%s5024_s13 + $0x88] sm:$0xff] }
 0x671   : > { %v1532_v56 = vadd.f32 %v1531_v54, %v1176_v48  ;;  %v1603_v57 = vadd.f32 %v1602_v55, %v1184_v49  ;;  %v1146_v55 = vld [vmem:[#allocation21 + $0x18] sm:$0xff] }
 0x672   : > { %2531 = vst [vmem:[#allocation2 + $0x4] sm:$0x1] %v1530_v52  ;;  %2533 = vst [vmem:[#allocation2 + $0x6] sm:$0x1] %v1601_v53  ;;  %v1260_v58 = vrot.slane %v1146_v55, %v5009_v25  ;;  %v1276_v25 = vrot.slane %v1146_v55, %v5032_v42 }
 0x673   : > { %2532 = vst [vmem:[#allocation2 + $0x5] sm:$0x1] %v1532_v56  ;;  %2534 = vst [vmem:[#allocation2 + $0x7] sm:$0x1] %v1603_v57  ;;  %v1252_v57 = vrot.slane %v1146_v55, %v5007_v24  ;;  %v1268_v24 = vrot.slane %v1146_v55, %v5030_v41 }
 0x67a   : > { %v2602_v59 = vld [vmem:[#allocation2] sm:$0xff] }
 0x67b   : > { %2564 = vst [vmem:[%s5043_s19] sm:$0xff] %v2602_v59 }
 0x67f   : > { %v1671_v1 = vpop.f32.mrb[6].mxu0  ;;  %v1742_v2 = vpop.f32.mrb[6].mxu1 }
 0x680   : > { %v1672_v3 = vadd.f32 %v1671_v1, %v1188_v61  ;;  %v1743_v4 = vadd.f32 %v1742_v2, %v1196_v62  ;;  %v1673_v5 = vpop.f32.mrb[7].mxu0  ;;  %v1744_v6 = vpop.f32.mrb[7].mxu1  ;;  %v1264_v61 = vrot.slane %v1146_v55, %v5013_v28  ;;  %v1280_v28 = vrot.slane %v1146_v55, %v5036_v45  ;;  %v2571_v45 = vld [vmem:[%s5024_s13 + $0x8] sm:$0xff] }
 0x681   : > { %v1674_v7 = vadd.f32 %v1673_v5, %v1192_v43  ;;  %v1745_v8 = vadd.f32 %v1744_v6, %v1200_v63 }
 0x682   : > { %2535 = vst [vmem:[#allocation2 + $0x8] sm:$0x1] %v1672_v3  ;;  %2537 = vst [vmem:[#allocation2 + $0xa] sm:$0x1] %v1743_v4 }
 0x683   : > { %2536 = vst [vmem:[#allocation2 + $0x9] sm:$0x1] %v1674_v7  ;;  %2538 = vst [vmem:[#allocation2 + $0xb] sm:$0x1] %v1745_v8 }
 0x68f   : > { %v1813_v13 = vpop.f32.mrb[8].mxu0  ;;  %v1884_v14 = vpop.f32.mrb[8].mxu1 }
 0x690   : > { %v1814_v15 = vadd.f32 %v1813_v13, %v1204_v9  ;;  %v1885_v17 = vadd.f32 %v1884_v14, %v1212_v10  ;;  %v1815_v18 = vpop.f32.mrb[9].mxu0  ;;  %v1886_v19 = vpop.f32.mrb[9].mxu1  ;;  %v2585_v14 = vld [vmem:[%s5024_s13 + $0x78] sm:$0xff] }
 0x691   : > { %v1816_v20 = vadd.f32 %v1815_v18, %v1208_v11  ;;  %v1887_v21 = vadd.f32 %v1886_v19, %v1216_v12  ;;  %v2586_v18 = vld [vmem:[%s5024_s13 + $0x80] sm:$0xff] }
 0x692   : > { %2539 = vst [vmem:[#allocation2 + $0xc] sm:$0x1] %v1814_v15  ;;  %2541 = vst [vmem:[#allocation2 + $0xe] sm:$0x1] %v1885_v17  ;;  %v2572_v17 = vld [vmem:[%s5024_s13 + $0x10] sm:$0xff] }
 0x693   : > { %2540 = vst [vmem:[#allocation2 + $0xd] sm:$0x1] %v1816_v20  ;;  %2542 = vst [vmem:[#allocation2 + $0xf] sm:$0x1] %v1887_v21  ;;  %v2573_v21 = vld [vmem:[%s5024_s13 + $0x18] sm:$0xff] }
 0x69a   : > { %v2603_v0 = vld [vmem:[#allocation2 + $0x8] sm:$0xff] }
 0x69b   : > { %v3802_v23 = vpack.c.bf16 %v2603_v0, %v2602_v59  ;;  %2565 = vst [vmem:[%s5043_s19 + $0x8] sm:$0xff] %v2603_v0  ;;  %v1256_v59 = vrot.slane %v1146_v55, %v5011_v27  ;;  %v1272_v27 = vrot.slane %v1146_v55, %v5034_v44  ;;  %v3304_v44 = vld [vmem:[#allocation21 + $0x20] ss:$0 sm:$0xff]  ;;  %v2574_v0 = vld [vmem:[%s5024_s13 + $0x20] sm:$0xff] }
 0x69d   : > { %3803 = vmatprep.subr.bf16.mxu0 %v3802_v23  ;;  %3810 = vmatprep.subr.bf16.mxu1 %v3802_v23 }
 0x69e   : > { %3805 = vmatpush3.bf16.msra.mxu0 %v3802_v23  ;;  %3812 = vmatpush3.bf16.msra.mxu1 %v3802_v23  ;;  %v2588_v23 = vld [vmem:[%s5024_s13 + $0x90] sm:$0xff] }
 0x69f   : > { %v1955_v60 = vpop.f32.mrb[10].mxu0  ;;  %v2026_v31 = vpop.f32.mrb[10].mxu1 }
 0x6a0   : > { %v1956_v32 = vadd.f32 %v1955_v60, %v1220_v26  ;;  %v2027_v33 = vadd.f32 %v2026_v31, %v1228_v29  ;;  %v1957_v34 = vpop.f32.mrb[11].mxu0  ;;  %v2028_v35 = vpop.f32.mrb[11].mxu1  ;;  %v2575_v26 = vld [vmem:[%s5024_s13 + $0x28] sm:$0xff]  ;;  %v2589_v29 = vld [vmem:[%s5024_s13 + $0x98] sm:$0xff] }
 0x6a1   : > { %v1958_v36 = vadd.f32 %v1957_v34, %v1224_v16  ;;  %v2029_v37 = vadd.f32 %v2028_v35, %v1232_v30  ;;  %v2576_v16 = vld [vmem:[%s5024_s13 + $0x30] sm:$0xff]  ;;  %v2590_v30 = vld [vmem:[%s5024_s13 + $0xa0] sm:$0xff]  ;;  %v2577_v31 = vld [vmem:[%s5024_s13 + $0x38] sm:$0xff] }
 0x6a2   : > { %2543 = vst [vmem:[#allocation2 + $0x10] sm:$0x1] %v1956_v32  ;;  %2545 = vst [vmem:[#allocation2 + $0x12] sm:$0x1] %v2027_v33  ;;  %v2591_v32 = vld [vmem:[%s5024_s13 + $0xa8] sm:$0xff]  ;;  %v2578_v33 = vld [vmem:[%s5024_s13 + $0x40] sm:$0xff] }
 0x6a3   : > { %2544 = vst [vmem:[#allocation2 + $0x11] sm:$0x1] %v1958_v36  ;;  %2546 = vst [vmem:[#allocation2 + $0x13] sm:$0x1] %v2029_v37  ;;  %v2592_v34 = vld [vmem:[%s5024_s13 + $0xb0] sm:$0xff]  ;;  %v2579_v35 = vld [vmem:[%s5024_s13 + $0x48] sm:$0xff] }
 0x6a4   : > { %v2593_v36 = vld [vmem:[%s5024_s13 + $0xb8] sm:$0xff]  ;;  %v2580_v37 = vld [vmem:[%s5024_s13 + $0x50] sm:$0xff] }
 0x6af   : > { %v2097_v47 = vpop.f32.mrb[12].mxu0  ;;  %v2168_v48 = vpop.f32.mrb[12].mxu1 }
 0x6b0   : > { %v2098_v49 = vadd.f32 %v2097_v47, %v1236_v38  ;;  %v2169_v50 = vadd.f32 %v2168_v48, %v1244_v39  ;;  %v2099_v51 = vpop.f32.mrb[13].mxu0  ;;  %v2170_v52 = vpop.f32.mrb[13].mxu1  ;;  %v2594_v38 = vld [vmem:[%s5024_s13 + $0xc0] sm:$0xff]  ;;  %v2581_v39 = vld [vmem:[%s5024_s13 + $0x58] sm:$0xff]  ;;  %v2596_v47 = vld [vmem:[%s5024_s13 + $0xd0] sm:$0xff] }
 0x6b1   : > { %v2100_v53 = vadd.f32 %v2099_v51, %v1240_v40  ;;  %v2171_v54 = vadd.f32 %v2170_v52, %v1248_v46  ;;  %v2595_v40 = vld [vmem:[%s5024_s13 + $0xc8] sm:$0xff]  ;;  %v2582_v46 = vld [vmem:[%s5024_s13 + $0x60] sm:$0xff]  ;;  %v2600_v52 = vld [vmem:[%s5024_s13 + $0xf0] sm:$0xff] }
 0x6b2   : > { %2547 = vst [vmem:[#allocation2 + $0x14] sm:$0x1] %v2098_v49  ;;  %2549 = vst [vmem:[#allocation2 + $0x16] sm:$0x1] %v2169_v50  ;;  %v2583_v48 = vld [vmem:[%s5024_s13 + $0x68] sm:$0xff]  ;;  %v2597_v49 = vld [vmem:[%s5024_s13 + $0xd8] sm:$0xff] }
 0x6b3   : > { %2548 = vst [vmem:[#allocation2 + $0x15] sm:$0x1] %v2100_v53  ;;  %2550 = vst [vmem:[#allocation2 + $0x17] sm:$0x1] %v2171_v54  ;;  %v2598_v50 = vld [vmem:[%s5024_s13 + $0xe0] sm:$0xff]  ;;  %v2599_v51 = vld [vmem:[%s5024_s13 + $0xe8] sm:$0xff] }
 0x6b4   : > { %v2601_v53 = vld [vmem:[%s5024_s13 + $0xf8] sm:$0xff]  ;;  %s4310_s13 = scalar_lea.vmem %s5145_s14, 16 }
 0x6b5   : > { %p4311_p6 = scmp.ne.s32.totalorder %s5145_s14, %s4310_s13  ;;  %p4318_p5 = scmp.lt.s32.totalorder %s4316_s20, %s4310_s13 }
 0x6b7   : > { %p4312_p1 = pnand %p4311_p6, %p5410_p3  ;;  %p4319_p7 = por %p4318_p5, %p4317_p0 }
 0x6b9   : > { %p4313_p12 = pneg %p4312_p1 }
 0x6ba   : > { %v2604_v56 = vld [vmem:[#allocation2 + $0x10] sm:$0xff] }
 0x6bb   : > { %2566 = vst [vmem:[%s5043_s19 + $0x10] sm:$0xff] %v2604_v56  ;;  %p4320_p10 = pnand %p4319_p7, %p4313_p12 }
 0x6bf   : > { %v2239_v62 = vpop.f32.mrb[14].mxu0  ;;  %v2310_v43 = vpop.f32.mrb[14].mxu1 }
 0x6c0   : > { %v2240_v63 = vadd.f32 %v2239_v62, %v1252_v57  ;;  %v2311_v1 = vadd.f32 %v2310_v43, %v1260_v58  ;;  %v2241_v2 = vpop.f32.mrb[15].mxu0  ;;  %v2312_v3 = vpop.f32.mrb[15].mxu1 }
 0x6c1   : > { %v2242_v4 = vadd.f32 %v2241_v2, %v1256_v59  ;;  %v2313_v5 = vadd.f32 %v2312_v3, %v1264_v61 }
 0x6c2   : > { %2551 = vst [vmem:[#allocation2 + $0x18] sm:$0x1] %v2240_v63  ;;  %2553 = vst [vmem:[#allocation2 + $0x1a] sm:$0x1] %v2311_v1 }
 0x6c3   : > { %2552 = vst [vmem:[#allocation2 + $0x19] sm:$0x1] %v2242_v4  ;;  %2554 = vst [vmem:[#allocation2 + $0x1b] sm:$0x1] %v2313_v5 }
 0x6cf   : > { %v2381_v6 = vpop.f32.mrb[16].mxu0  ;;  %v2452_v7 = vpop.f32.mrb[16].mxu1 }
 0x6d0   : > { %v2382_v8 = vadd.f32 %v2381_v6, %v1268_v24  ;;  %v2453_v9 = vadd.f32 %v2452_v7, %v1276_v25  ;;  %v2383_v10 = vpop.f32.mrb[17].mxu0  ;;  %v2454_v11 = vpop.f32.mrb[17].mxu1 }
 0x6d1   : > { %v2384_v12 = vadd.f32 %v2383_v10, %v1272_v27  ;;  %v2455_v13 = vadd.f32 %v2454_v11, %v1280_v28 }
 0x6d2   : > { %2555 = vst [vmem:[#allocation2 + $0x1c] sm:$0x1] %v2382_v8  ;;  %2557 = vst [vmem:[#allocation2 + $0x1e] sm:$0x1] %v2453_v9 }
 0x6d3   : > { %2556 = vst [vmem:[#allocation2 + $0x1d] sm:$0x1] %v2384_v12  ;;  %2558 = vst [vmem:[#allocation2 + $0x1f] sm:$0x1] %v2455_v13 }
 0x6da   : > { %v2605_v41 = vld [vmem:[#allocation2 + $0x18] sm:$0xff] }
 0x6db   : > { %v3806_v42 = vpack.c.bf16 %v2605_v41, %v2604_v56  ;;  %2567 = vst [vmem:[%s5043_s19 + $0x18] sm:$0xff] %v2605_v41 }
 0x6dd   : > { %3807 = vmatprep.subr.bf16.mxu0 %v3806_v42  ;;  %3811 = vmatprep.subr.bf16.mxu1 %v3806_v42 }
 0x6de   : > { %3809 = vmatpush3.bf16.msra.mxu0 %v3806_v42  ;;  %3813 = vmatpush3.bf16.msra.mxu1 %v3806_v42 }
 0x6df   : > { %v2523_v15 = vpop.f32.mrb[18].mxu0 }
 0x6e0   : > { %v2524_v19 = vadd.f32 %v3304_v44, %v2523_v15  ;;  %v3465_v20 = vpop.f32.mrb[19].mxu0 }
 0x6e1   : > { %3475 = vmatmul.mubr.msk.f32.vlgmr.msra.gmra.mrb[20].mxu0 %vm2613_vm4, %v2571_v45  ;;  %3496 = vmatmul.mubr.msk.f32.vlgmr.msra.gmra.mrb[18].mxu1 %vm2613_vm4, %v2585_v14 }
 0x6e2   : > { %2559 = vst [vmem:[#allocation3] sm:$0x1] %v2524_v19  ;;  %3477 = vmatprep.mubr.msk.f32.mxu0 %vm2613_vm4, %v2572_v17  ;;  %3498 = vmatprep.mubr.msk.f32.mxu1 %vm2613_vm4, %v2586_v18 }
 0x6e5   : > { %3478 = vmatmul.mubr.msk.f32.gmra.mrb[22].mxu0 %vm2613_vm4, %v2573_v21  ;;  %3499 = vmatmul.mubr.msk.f32.gmra.mrb[20].mxu1 %vm2613_vm4, %v2587_v22 }
 0x6e6   : > { %3480 = vmatprep.mubr.msk.f32.mxu0 %vm2613_vm4, %v2574_v0  ;;  %3501 = vmatprep.mubr.msk.f32.mxu1 %vm2613_vm4, %v2588_v23 }
 0x6e9   : > { %3481 = vmatmul.mubr.msk.f32.gmra.mrb[24].mxu0 %vm2613_vm4, %v2575_v26  ;;  %3502 = vmatmul.mubr.msk.f32.gmra.mrb[22].mxu1 %vm2613_vm4, %v2589_v29  ;;  %v2568_v60 = vld [vmem:[#allocation3] sm:$0x1] }
 0x6ea   : > { %3483 = vmatprep.mubr.msk.f32.mxu0 %vm2613_vm4, %v2576_v16  ;;  %3504 = vmatprep.mubr.msk.f32.mxu1 %vm2613_vm4, %v2590_v30  ;;  %2569 = vst [vmem:[%s658_s22] sm:$0x1] %v2568_v60 }
 0x6ed   : > { %3484 = vmatmul.mubr.msk.f32.gmra.mrb[26].mxu0 %vm2613_vm4, %v2577_v31  ;;  %3505 = vmatmul.mubr.msk.f32.gmra.mrb[24].mxu1 %vm2613_vm4, %v2591_v32 }
 0x6ee   : > { %3486 = vmatprep.mubr.msk.f32.mxu0 %vm2613_vm4, %v2578_v33  ;;  %3507 = vmatprep.mubr.msk.f32.mxu1 %vm2613_vm4, %v2592_v34 }
 0x6f1   : > { %3487 = vmatmul.mubr.msk.f32.gmra.mrb[28].mxu0 %vm2613_vm4, %v2579_v35  ;;  %3508 = vmatmul.mubr.msk.f32.gmra.mrb[26].mxu1 %vm2613_vm4, %v2593_v36 }
 0x6f2   : > { %3489 = vmatprep.mubr.msk.f32.mxu0 %vm2613_vm4, %v2580_v37  ;;  %3510 = vmatprep.mubr.msk.f32.mxu1 %vm2613_vm4, %v2594_v38 }
 0x6f5   : > { %3490 = vmatmul.mubr.msk.f32.gmra.mrb[30].mxu0 %vm2613_vm4, %v2581_v39  ;;  %3511 = vmatmul.mubr.msk.f32.gmra.mrb[28].mxu1 %vm2613_vm4, %v2595_v40 }
 0x6f6   : > { %3492 = vmatprep.mubr.msk.f32.mxu0 %vm2613_vm4, %v2582_v46  ;;  %3513 = vmatprep.mubr.msk.f32.mxu1 %vm2613_vm4, %v2596_v47 }
 0x6f9   : > { %3493 = vmatmul.mubr.msk.f32.gmra.mrb[32].mxu0 %vm2613_vm4, %v2583_v48  ;;  %3514 = vmatmul.mubr.msk.f32.gmra.mrb[30].mxu1 %vm2613_vm4, %v2597_v49 }
 0x6fa   : > { %3516 = vmatprep.mubr.msk.f32.mxu1 %vm2613_vm4, %v2598_v50 }
 0x6fd   : > { %3517 = vmatmul.mubr.msk.f32.gmra.mrb[32].mxu1 %vm2613_vm4, %v2599_v51 }
 0x6fe   : > { %3519 = vmatprep.mubr.msk.f32.mxu1 %vm2613_vm4, %v2600_v52 }
 0x701   : > { %3520 = vmatmul.mubr.msk.f32.gmra.mrb[34].mxu1 %vm2613_vm4, %v2601_v53 }
 0x702   : > { %4323 = shalt.err (!%p4320_p10)
}
 0x703   : > { %s4324_s22 = scalar_lea.hbm %s5141_s0, 16  ;;  %s4328_s26 = scalar_lea.hbm %s5409_s27, 32 }
 0x704   : > { %p4325_p13 = scmp.ne.s32.totalorder %s5141_s0, %s4324_s22  ;;  %p4329_p8 = scmp.lt.u32.totalorder %s5141_s0, %s5409_s27 }
 0x705   : > { %p4330_p9 = scmp.lt.u32.totalorder %s4328_s26, %s4324_s22  ;;  %p4332_p6 = scmp.lt.u32.totalorder %s4324_s22, %s5141_s0 }
 0x706   : > { %p4326_p11 = pnand %p4325_p13, %p5410_p3 }
 0x707   : > { %p4331_p4 = por %p4330_p9, %p4329_p8 }
 0x708   : > { %p4327_p2 = pneg %p4326_p11 }
 0x709   : > { %p4333_p1 = por %p4332_p6, %p4331_p4 }
 0x70b   : > { %p4334_p12 = pnand %p4333_p1, %p4327_p2 }
 0x70d   : > { %4337 = shalt.err (!%p4334_p12)
}
 0x70e   : > { %3857 = dma.vmem_to_hbm [thread:$0]  (%p5410_p3), %s5145_s14, 16, %s5141_s0, %s5148_s4  }
 0x70f   : > { %s5411_s3 = sld [smem:[#allocation44_spill]]  ;;  %s2990_s22 = sshll.u32 %s5043_s19, 4  ;;  %s5180_s22 = int_to_ptr.vmem [resolvable:$true] %s2990_s22 }
 0x710   : > { %s2968_s26 = scalar_lea.sflag [#allocation6], %s4902_s16  ;;  %s4338_s23 = scalar_lea.vmem %s5180_s22, 512 }
 0x711   : > { %p4339_p0 = scmp.ne.s32.totalorder %s5180_s22, %s4338_s23  ;;  %s4493_s5 = smov [#allocation22]  }
 0x712   : > { %s4342_s14 = sshll.u32 %s4493_s5, 4  ;;  %s4343_s14 = int_to_ptr.vmem [resolvable:$false] %s4342_s14 }
 0x713   : > { %p4340_p5 = pnand %p4339_p0, %p5410_p3  ;;  %s4344_s0 = scalar_lea.vmem %s4343_s14, 1024 }
 0x714   : > { %p4345_p10 = scmp.lt.s32.totalorder %s5180_s22, %s4343_s14  ;;  %p4346_p13 = scmp.lt.s32.totalorder %s4344_s0, %s4338_s23 }
 0x715   : > { %s5177_s25 = scalar_lea.hbm %s5411_s3, %s3365_s2  ;;  %p4341_p7 = pneg %p4340_p5 }
 0x716   : > { %p4347_p11 = por %p4346_p13, %p4345_p10 }
 0x718   : > { %p4348_p2 = pnand %p4347_p11, %p4341_p7 }
 0x71a   : > { %4351 = shalt.err (!%p4348_p2)
}
 0x71b   : > { %s4352_s2 = scalar_lea.hbm %s5177_s25, 512  ;;  %s4356_s20 = scalar_lea.hbm %s5411_s3, 1024 }
 0x71c   : > { %p4353_p8 = scmp.ne.s32.totalorder %s5177_s25, %s4352_s2  ;;  %p4357_p6 = scmp.lt.u32.totalorder %s5177_s25, %s5411_s3 }
 0x71d   : > { %p4358_p1 = scmp.lt.u32.totalorder %s4356_s20, %s4352_s2  ;;  %p4360_p0 = scmp.lt.u32.totalorder %s4352_s2, %s5177_s25 }
 0x71e   : > { %p4354_p9 = pnand %p4353_p8, %p5410_p3 }
 0x71f   : > { %p4359_p12 = por %p4358_p1, %p4357_p6 }
 0x720   : > { %p4355_p4 = pneg %p4354_p9 }
 0x721   : > { %p4361_p5 = por %p4360_p0, %p4359_p12 }
 0x723   : > { %p4362_p7 = pnand %p4361_p5, %p4355_p4 }
 0x725   : > { %4365 = shalt.err (!%p4362_p7)
}
 0x726   : > { %s4494_s23 = smov 128   ;;  %s4495_s0 = smov 8   ;;  %v5210_v54 = vld [vmem:[#allocation3] ss:$0 sm:$0xff] }
 0x727   : > { %3856 = dma.vmem_to_hbm [thread:$0]  (%p5410_p3), %s5180_s22, 512, %s5177_s25, %s2968_s26, %s4494_s23, %s4494_s23, %s4495_s0  }
 0x728   : > { %s3299_s19 = sshll.u32 %s4902_s16, 8  ;;  %s3366_s16 = sshll.u32 %s5407_s11, 12 }
 0x729   : > { %s5216_s2 = scalar_lea.vmem [#allocation25], %s3299_s19  ;;  %s5412_s13 = sld [smem:[#allocation46_spill]] }
 0x72a   : > { %s3021_s25 = sshll.u32 %s5216_s2, 4  ;;  %s4496_s5 = smov [#allocation25]   ;;  %s5283_s25 = int_to_ptr.vmem [resolvable:$true] %s3021_s25 }
 0x72b   : > { %s4366_s11 = scalar_lea.vmem %s5283_s25, 4096  ;;  %s4370_s14 = sshll.u32 %s4496_s5, 4  ;;  %s4371_s14 = int_to_ptr.vmem [resolvable:$false] %s4370_s14 }
 0x72c   : > { %p4367_p10 = scmp.ne.s32.totalorder %s5283_s25, %s4366_s11  ;;  %s4372_s19 = scalar_lea.vmem %s4371_s14, 8192 }
 0x72d   : > { %p4373_p2 = scmp.lt.s32.totalorder %s5283_s25, %s4371_s14  ;;  %p4374_p8 = scmp.lt.s32.totalorder %s4372_s19, %s4366_s11 }
 0x72e   : > { %p4368_p13 = pnand %p4367_p10, %p5410_p3 }
 0x72f   : > { %s5281_s20 = scalar_lea.hbm %s5412_s13, %s3366_s16  ;;  %p4375_p9 = por %p4374_p8, %p4373_p2 }
 0x730   : > { %p4369_p11 = pneg %p4368_p13 }
 0x732   : > { %p4376_p4 = pnand %p4375_p9, %p4369_p11 }
 0x7b4   : > { %v3476_v55 = vpop.f32.mrb[20].mxu0  ;;  %v3497_v56 = vpop.f32.mrb[18].mxu1 }
 0x7b5   : > { %v2782_v57 = vadd.f32 %v3476_v55, %v5210_v54  ;;  %v2852_v58 = vadd.f32 %v3497_v56, %v5210_v54  ;;  %v2776_v59 = vpop.f32.mrb[21].mxu0  ;;  %v2846_v61 = vpop.f32.mrb[19].mxu1 }
 0x7b6   : > { %v2777_v62 = vadd.f32 %v5210_v54, %v2776_v59  ;;  %v2847_v43 = vadd.f32 %v5210_v54, %v2846_v61 }
 0x7b7   : > { %2936 = vst [vmem:[%s5216_s2 + $0x8] sm:$0xff] %v2782_v57  ;;  %2950 = vst [vmem:[%s5216_s2 + $0x78] sm:$0xff] %v2852_v58 }
 0x7b8   : > { %2935 = vst [vmem:[%s5216_s2] sm:$0xff] %v2777_v62  ;;  %2949 = vst [vmem:[%s5216_s2 + $0x70] sm:$0xff] %v2847_v43  ;;  %v3479_v63 = vpop.f32.mrb[22].mxu0  ;;  %v3500_v1 = vpop.f32.mrb[20].mxu1 }
 0x7b9   : > { %v2792_v2 = vadd.f32 %v3479_v63, %v5210_v54  ;;  %v2862_v3 = vadd.f32 %v3500_v1, %v5210_v54  ;;  %v2786_v4 = vpop.f32.mrb[23].mxu0  ;;  %v2856_v5 = vpop.f32.mrb[21].mxu1 }
 0x7ba   : > { %v2787_v24 = vadd.f32 %v5210_v54, %v2786_v4  ;;  %v2857_v25 = vadd.f32 %v5210_v54, %v2856_v5 }
 0x7bb   : > { %2938 = vst [vmem:[%s5216_s2 + $0x18] sm:$0xff] %v2792_v2  ;;  %2952 = vst [vmem:[%s5216_s2 + $0x88] sm:$0xff] %v2862_v3 }
 0x7bc   : > { %2937 = vst [vmem:[%s5216_s2 + $0x10] sm:$0xff] %v2787_v24  ;;  %2951 = vst [vmem:[%s5216_s2 + $0x80] sm:$0xff] %v2857_v25  ;;  %v3482_v27 = vpop.f32.mrb[24].mxu0  ;;  %v3503_v28 = vpop.f32.mrb[22].mxu1 }
 0x7bd   : > { %v2802_v6 = vadd.f32 %v3482_v27, %v5210_v54  ;;  %v2872_v7 = vadd.f32 %v3503_v28, %v5210_v54  ;;  %v2796_v8 = vpop.f32.mrb[25].mxu0  ;;  %v2866_v9 = vpop.f32.mrb[23].mxu1 }
 0x7be   : > { %v2797_v10 = vadd.f32 %v5210_v54, %v2796_v8  ;;  %v2867_v11 = vadd.f32 %v5210_v54, %v2866_v9 }
 0x7bf   : > { %2940 = vst [vmem:[%s5216_s2 + $0x28] sm:$0xff] %v2802_v6  ;;  %2954 = vst [vmem:[%s5216_s2 + $0x98] sm:$0xff] %v2872_v7 }
 0x7c0   : > { %2939 = vst [vmem:[%s5216_s2 + $0x20] sm:$0xff] %v2797_v10  ;;  %2953 = vst [vmem:[%s5216_s2 + $0x90] sm:$0xff] %v2867_v11  ;;  %v3485_v12 = vpop.f32.mrb[26].mxu0  ;;  %v3506_v13 = vpop.f32.mrb[24].mxu1 }
 0x7c1   : > { %v2812_v41 = vadd.f32 %v3485_v12, %v5210_v54  ;;  %v2882_v42 = vadd.f32 %v3506_v13, %v5210_v54  ;;  %v2806_v44 = vpop.f32.mrb[27].mxu0  ;;  %v2876_v45 = vpop.f32.mrb[25].mxu1 }
 0x7c2   : > { %v2807_v14 = vadd.f32 %v5210_v54, %v2806_v44  ;;  %v2877_v15 = vadd.f32 %v5210_v54, %v2876_v45 }
 0x7c3   : > { %2942 = vst [vmem:[%s5216_s2 + $0x38] sm:$0xff] %v2812_v41  ;;  %2956 = vst [vmem:[%s5216_s2 + $0xa8] sm:$0xff] %v2882_v42 }
 0x7c4   : > { %2941 = vst [vmem:[%s5216_s2 + $0x30] sm:$0xff] %v2807_v14  ;;  %2955 = vst [vmem:[%s5216_s2 + $0xa0] sm:$0xff] %v2877_v15  ;;  %v3488_v17 = vpop.f32.mrb[28].mxu0  ;;  %v3509_v18 = vpop.f32.mrb[26].mxu1 }
 0x7c5   : > { %v2822_v19 = vadd.f32 %v3488_v17, %v5210_v54  ;;  %v2892_v20 = vadd.f32 %v3509_v18, %v5210_v54  ;;  %v2816_v21 = vpop.f32.mrb[29].mxu0  ;;  %v2886_v22 = vpop.f32.mrb[27].mxu1 }
 0x7c6   : > { %v2817_v0 = vadd.f32 %v5210_v54, %v2816_v21  ;;  %v2887_v23 = vadd.f32 %v5210_v54, %v2886_v22 }
 0x7c7   : > { %2944 = vst [vmem:[%s5216_s2 + $0x48] sm:$0xff] %v2822_v19  ;;  %2958 = vst [vmem:[%s5216_s2 + $0xb8] sm:$0xff] %v2892_v20 }
 0x7c8   : > { %2943 = vst [vmem:[%s5216_s2 + $0x40] sm:$0xff] %v2817_v0  ;;  %2957 = vst [vmem:[%s5216_s2 + $0xb0] sm:$0xff] %v2887_v23  ;;  %v3491_v26 = vpop.f32.mrb[30].mxu0  ;;  %v3512_v29 = vpop.f32.mrb[28].mxu1 }
 0x7c9   : > { %v2832_v16 = vadd.f32 %v3491_v26, %v5210_v54  ;;  %v2902_v30 = vadd.f32 %v3512_v29, %v5210_v54  ;;  %v2826_v60 = vpop.f32.mrb[31].mxu0  ;;  %v2896_v31 = vpop.f32.mrb[29].mxu1 }
 0x7ca   : > { %v2827_v32 = vadd.f32 %v5210_v54, %v2826_v60  ;;  %v2897_v33 = vadd.f32 %v5210_v54, %v2896_v31 }
 0x7cb   : > { %2946 = vst [vmem:[%s5216_s2 + $0x58] sm:$0xff] %v2832_v16  ;;  %2960 = vst [vmem:[%s5216_s2 + $0xc8] sm:$0xff] %v2902_v30 }
 0x7cc   : > { %2945 = vst [vmem:[%s5216_s2 + $0x50] sm:$0xff] %v2827_v32  ;;  %2959 = vst [vmem:[%s5216_s2 + $0xc0] sm:$0xff] %v2897_v33  ;;  %v3494_v34 = vpop.f32.mrb[32].mxu0  ;;  %v3515_v35 = vpop.f32.mrb[30].mxu1 }
 0x7cd   : > { %v2842_v36 = vadd.f32 %v3494_v34, %v5210_v54  ;;  %v2912_v37 = vadd.f32 %v3515_v35, %v5210_v54  ;;  %v2836_v38 = vpop.f32.mrb[33].mxu0  ;;  %v2906_v39 = vpop.f32.mrb[31].mxu1 }
 0x7ce   : > { %v2837_v40 = vadd.f32 %v5210_v54, %v2836_v38  ;;  %v2907_v46 = vadd.f32 %v5210_v54, %v2906_v39 }
 0x7cf   : > { %2948 = vst [vmem:[%s5216_s2 + $0x68] sm:$0xff] %v2842_v36  ;;  %2962 = vst [vmem:[%s5216_s2 + $0xd8] sm:$0xff] %v2912_v37 }
 0x7d0   : > { %2947 = vst [vmem:[%s5216_s2 + $0x60] sm:$0xff] %v2837_v40  ;;  %2961 = vst [vmem:[%s5216_s2 + $0xd0] sm:$0xff] %v2907_v46  ;;  %v3518_v47 = vpop.f32.mrb[32].mxu1 }
 0x7d1   : > { %v2922_v48 = vadd.f32 %v3518_v47, %v5210_v54  ;;  %v2916_v49 = vpop.f32.mrb[33].mxu1 }
 0x7d2   : > { %v2917_v50 = vadd.f32 %v5210_v54, %v2916_v49 }
 0x7d3   : > { %2964 = vst [vmem:[%s5216_s2 + $0xe8] sm:$0xff] %v2922_v48 }
 0x7d4   : > { %2963 = vst [vmem:[%s5216_s2 + $0xe0] sm:$0xff] %v2917_v50  ;;  %v3521_v51 = vpop.f32.mrb[34].mxu1 }
 0x7d5   : > { %v2932_v52 = vadd.f32 %v3521_v51, %v5210_v54  ;;  %v2926_v53 = vpop.f32.mrb[35].mxu1 }
 0x7d6   : > { %v2927_v55 = vadd.f32 %v5210_v54, %v2926_v53 }
 0x7d7   : > { %2966 = vst [vmem:[%s5216_s2 + $0xf8] sm:$0xff] %v2932_v52 }
 0x7d8   : > { %2965 = vst [vmem:[%s5216_s2 + $0xf0] sm:$0xff] %v2927_v55 }
 0x7d9   : > { %4379 = shalt.err (!%p4376_p4)
}
 0x7da   : > { %s4380_s2 = scalar_lea.hbm %s5281_s20, 4096  ;;  %s4384_s26 = scalar_lea.hbm %s5412_s13, 8192 }
 0x7db   : > { %p4381_p6 = scmp.ne.s32.totalorder %s5281_s20, %s4380_s2  ;;  %p4385_p0 = scmp.lt.u32.totalorder %s5281_s20, %s5412_s13 }
 0x7dc   : > { %p4386_p5 = scmp.lt.u32.totalorder %s4384_s26, %s4380_s2  ;;  %p4388_p10 = scmp.lt.u32.totalorder %s4380_s2, %s5281_s20 }
 0x7dd   : > { %p4382_p1 = pnand %p4381_p6, %p5410_p3 }
 0x7de   : > { %p4387_p7 = por %p4386_p5, %p4385_p0 }
 0x7df   : > { %p4383_p12 = pneg %p4382_p1 }
 0x7e0   : > { %p4389_p13 = por %p4388_p10, %p4387_p7 }
 0x7e2   : > { %p4390_p11 = pnand %p4389_p13, %p4383_p12 }
 0x7e4   : > { %4393 = shalt.err (!%p4390_p11)
}
 0x7e5   : > { %3858 = dma.vmem_to_hbm [thread:$0]  (%p5410_p3), %s5283_s25, 4096, %s5281_s20, %s5148_s4, %s4494_s23, %s4494_s23, %s4495_s0  }
 0x7e6 PF: > { %s3036_s11 = sand.u32 1, %s4452_s29   ;;  %p5413_p2 = scmp.ne.s32.totalorder %s5391_s28, 0 }
 0x7e7   : > { %p5414_p8 = scmp.ge.s32.totalorder %s4472_s18, 2  ;;  %s3037_s19 = scalar_lea.sflag [#allocation6], %s3036_s11 }
 0x7e9   : > { %p3898_p9 = pnand %p5414_p8, %p5413_p2 }
 0x7eb   : > { %4443 = dma.done.wait (!%p3898_p9), %s3037_s19, 512  }
 0x7ec   : > { %4445 = vsyncadd (!%p3898_p9), %s3037_s19, 4294966784  ;;  %s5415_s1 = sadd.s32 4294967294, %s4472_s18  }
 0x7ed   : > { %s3045_s2 = sand.u32 1, %s5415_s1  }
 0x7ee   : > { %s3046_s16 = scalar_lea.sflag [#allocation24], %s3045_s2 }
 0x7ef   : > { %4447 = dma.done.wait (!%p3898_p9), %s3046_s16, 4112  }
 0x7f0   : > { %4449 = vsyncadd (!%p3898_p9), %s3046_s16, 4294963184  ;;  %s39_s18 = sadd.s32 1, %s4472_s18   ;;  %s5416_s29 = smov %s4456_s30 }
 0x7f1   : > { %p36_p3 = scmp.ge.s32.totalorder %s39_s18, 4   ;;  %s5417_s30 = smov %s4460_s15 }
 0x7f2   : > { %s5418_s15 = smov %s4852_s21  ;;  %s5419_s16 = smov %s4468_s17 }
 0x7f3   : > { %s5420_s17 = smov %s5422_s12  ;;  %38 = sbr.rel (!%p36_p3) target bundleno = 24 (0x18), region = 192 }
 0x7fa   :  { %3059 = vsyncpa [#allocation5], 1 }
 0x7fb   :  { %3061 = vsyncpa [#allocation5 + $0x1], 1 }
 0x7fc   :  { %3062 = vsyncpa [#allocation8], 1 }
 0x7fd   :  { %3063 = vsyncpa [#allocation11], 1 }
 0x7fe   :  { %3064 = vsyncpa [#allocation14], 1 }
 0x7ff   :  { %3065 = vsyncpa [#allocation17], 1 }
 0x800   :  { %3066 = vsyncpa [#allocation20], 1 }
 0x801   :  { %3067 = vsyncpa [#allocation6], 1 }
 0x802   :  { %3069 = vsyncpa [#allocation6 + $0x1], 1 }
 0x803   :  { %3070 = vsyncpa [#allocation24], 1 }
 0x804   :  { %3072 = vsyncpa [#allocation24 + $0x1], 1 }

</bundles_post_ra>
